<compile_context>
chip_gen: v6e
topology: v6e:2x2x1
jax: 0.10.0
libtpu: 0.0.40
codegen_flags: <defaults>
</compile_context>

<pallas_src>
import functools
import math

import jax
import jax.numpy as jnp
from jax import lax
from jax.experimental import pallas as pl
from jax.experimental.pallas import tpu as pltpu


def _round_up(x, m):
    return (x + m - 1) // m * m


def _default_vmem_limit_bytes():
    """Explicit scoped-VMEM limit: physical capacity minus headroom."""
    try:
        cap = pltpu.get_tpu_info().vmem_capacity_bytes
    except Exception:
        cap = 64 * 1024 * 1024          # conservative fallback (v7x physical)
    return int(cap - 8 * 1024 * 1024)   # ~120 MiB on v5e/v6e, ~56 MiB on v7x


def _sparse_attn_kernel(src_ref, dst_ref, q_ref, kv_ref, bdiag_ref,
                        out_ref, acc_ref, *, hidden_pad, inv_scale):
    """One edge-block step: gather endpoints, score, scatter-add into [wV|Z]."""
    step = pl.program_id(0)

    @pl.when(step == 0)
    def _init():
        acc_ref[...] = jnp.zeros_like(acc_ref)

    e_blk = src_ref.shape[0]
    t_pad = q_ref.shape[0]
    hp = hidden_pad

    # --- endpoint one-hots: ONE iota reused for both compares; padded edges
    #     carry index -1 which never matches, so they contribute nothing. ---
    node_iota = lax.broadcasted_iota(jnp.int32, (e_blk, t_pad), 1)
    onehot_src = (src_ref[...] == node_iota).astype(jnp.bfloat16)        # (E_blk, Tp)
    onehot_dst = (dst_ref[...] == node_iota).astype(jnp.bfloat16)        # (E_blk, Tp)

    # --- fused endpoint gathers on the MXU (bf16 x bf16 -> f32 accumulate) ---
    kv_src = jnp.dot(onehot_src, kv_ref[...],
                     preferred_element_type=jnp.float32)                 # (E_blk, 2*Hp)
    q_dst = jnp.dot(onehot_dst, q_ref[...],
                    preferred_element_type=jnp.float32)                  # (E_blk, Hp)
    k_src = kv_src[:, :hp]
    v_src = kv_src[:, hp:]

    # --- per-head score + lane re-broadcast in ONE block-diagonal matmul:
    #     exp commutes with the per-head broadcast, so the reduce-and-rebroadcast
    #     is a single lane-dense MXU pass against a precomputed (Hp, Hp) mask. ---
    kq = (k_src * q_dst * inv_scale).astype(jnp.bfloat16)                # (E_blk, Hp)
    s_full = jnp.dot(kq, bdiag_ref[...],
                     preferred_element_type=jnp.float32)                 # (E_blk, Hp)
    p_full = jnp.exp(jnp.clip(s_full, -5.0, 5.0))                        # (E_blk, Hp)

    # --- single fused scatter-add of [v*p | p] into the [wV | Z] accumulator.
    #     Reuse onehot_dst by contracting its edge dim (0): no third one-hot. ---
    scat_rhs = jnp.concatenate([v_src * p_full, p_full],
                               axis=1).astype(jnp.bfloat16)              # (E_blk, 2*Hp)
    acc_ref[...] += lax.dot_general(
        onehot_dst, scat_rhs,
        dimension_numbers=(((0,), (0,)), ((), ())),
        preferred_element_type=jnp.float32)                              # (Tp, 2*Hp)

    # --- finalize: one lane-dense (Tp, Hp) store (exact division; runs once) ---
    @pl.when(step == pl.num_programs(0) - 1)
    def _finalize():
        w_v = acc_ref[:, :hp]
        z = acc_ref[:, hp:]
        out_ref[...] = (w_v / (z + 1e-6)).astype(out_ref.dtype)


def core_attention_sparse(q, k, v, edge_index, num_heads, *, edge_block=256):
    """CoreAttention.sparse_attention (the default forward path) on TPU."""
    B, N, H = q.shape
    assert H % num_heads == 0
    head_dim = H // num_heads
    inv_scale = 1.0 / math.sqrt(head_dim)
    T = B * N
    E = edge_index.shape[1]

    # Pad only the total hidden to a lane multiple (no per-head padding) and the
    # node axis (MXU contraction dim of the gathers / M dim of the scatter).
    Hp = _round_up(H, 128)
    Tp = _round_up(T, 128)

    def pad_nodes(x):
        xf = x.reshape(T, H)
        xf = jnp.pad(xf, ((0, Tp - T), (0, Hp - H)))
        return xf.astype(jnp.bfloat16)

    q_p = pad_nodes(q)
    kv_p = jnp.concatenate([pad_nodes(k), pad_nodes(v)], axis=1)          # (Tp, 2*Hp)

    # Block-diagonal head matrix (exact 0/1 in bf16), built ONCE in the wrapper.
    # Padding lanes are excluded; their score is 0 -> p=1, but the corresponding
    # v lanes are zero-padded and the lanes are sliced off at the end.
    lane = jnp.arange(Hp, dtype=jnp.int32)
    head_of = jnp.where(lane < H, lane // head_dim, -1)
    valid = lane < H
    bdiag = ((head_of[:, None] == head_of[None, :])
             & valid[:, None] & valid[None, :]).astype(jnp.bfloat16)      # (Hp, Hp)

    # Edge padding: index -1 never matches any node, so padded edges drop out.
    E_pad = _round_up(max(E, 1), edge_block)
    src = edge_index[0].astype(jnp.int32)
    dst = edge_index[1].astype(jnp.int32)
    if E_pad != E:
        fill = jnp.full((E_pad - E,), -1, jnp.int32)
        src = jnp.concatenate([src, fill])
        dst = jnp.concatenate([dst, fill])
    src_col = src.reshape(E_pad, 1)
    dst_col = dst.reshape(E_pad, 1)

    kernel = functools.partial(_sparse_attn_kernel,
                               hidden_pad=Hp, inv_scale=inv_scale)

    cost = pl.CostEstimate(
        flops=int(2 * E_pad * Tp * (2 * Hp)        # fused k||v one-hot gather
                  + 2 * E_pad * Tp * Hp            # q one-hot gather
                  + 2 * E_pad * Hp * Hp            # block-diagonal score/broadcast
                  + 2 * E_pad * Tp * (2 * Hp)),    # fused [wV|Z] scatter-add
        transcendentals=int(E_pad * Hp),
        bytes_accessed=int(2 * Tp * Hp + 2 * Tp * 2 * Hp + 2 * Hp * Hp
                           + 4 * Tp * Hp + 8 * E_pad),
    )

    out = pl.pallas_call(
        kernel,
        out_shape=jax.ShapeDtypeStruct((Tp, Hp), jnp.float32),
        grid=(E_pad // edge_block,),
        in_specs=[
            # Edge-id blocks stream over the grid (the only pipelined operands).
            pl.BlockSpec((edge_block, 1), lambda i: (i, 0)),              # src ids
            pl.BlockSpec((edge_block, 1), lambda i: (i, 0)),              # dst ids
            # Resident operands: whole array in VMEM, single copy (no double
            # buffering of constant-index blocks).
            pl.BlockSpec(memory_space=pltpu.MemorySpace.VMEM),            # q
            pl.BlockSpec(memory_space=pltpu.MemorySpace.VMEM),            # k || v
            pl.BlockSpec(memory_space=pltpu.MemorySpace.VMEM),            # block-diag
        ],
        out_specs=pl.BlockSpec(memory_space=pltpu.MemorySpace.VMEM),
        scratch_shapes=[pltpu.VMEM((Tp, 2 * Hp), jnp.float32)],           # [wV | Z]
        compiler_params=pltpu.CompilerParams(
            dimension_semantics=("arbitrary",),                           # edge axis = reduction
            vmem_limit_bytes=_default_vmem_limit_bytes()),
        cost_estimate=cost,
    )(src_col, dst_col, q_p, kv_p, bdiag)

    return out[:T, :H].reshape(B, N, H)


def _reference_sparse_attention(q, k, v, edge_index, num_heads):
    """Pure-JAX re-implementation of the PyTorch sparse_attention (for checking)."""
    B, N, H = q.shape
    hd = H // num_heads
    scale = math.sqrt(hd)
    T = B * N
    qf = q.reshape(T, num_heads, hd)
    kf = k.reshape(T, num_heads, hd)
    vf = v.reshape(T, num_heads, hd)
    src = edge_index[0]
    dst = edge_index[1]
    s = (kf[src] * qf[dst]) / scale
    s = jnp.clip(jnp.sum(s, axis=-1, keepdims=True), -5.0, 5.0)
    p = jnp.exp(s)
    msg = vf[src] * p
    wV = jax.ops.segment_sum(msg, dst, num_segments=T)
    Z = jax.ops.segment_sum(p, dst, num_segments=T)
    x = wV / (Z + 1e-6)
    return x.reshape(B, N, H)


if __name__ == "__main__":
    # CoreAttention(hidden_size=32, attention_dropout_rate=0.0, num_heads=4, device)
    # (no learned parameters; dropout is not used on the sparse path)
    B, N, hidden, num_heads, E = 2, 8, 32, 4, 300
    T = B * N

    key = jax.random.PRNGKey(0)
    kq_, kk_, kv_, ke_ = jax.random.split(key, 4)
    q = jax.random.normal(kq_, (B, N, hidden), dtype=jnp.float32)
    k = jax.random.normal(kk_, (B, N, hidden), dtype=jnp.float32)
    v = jax.random.normal(kv_, (B, N, hidden), dtype=jnp.float32)
    edge_index = jax.random.randint(ke_, (2, E), 0, T, dtype=jnp.int32)

    out = core_attention_sparse(q, k, v, edge_index, num_heads)
    out = jax.block_until_ready(out)
    assert out.shape == (B, N, hidden)
    assert bool(jnp.all(jnp.isfinite(out)))

    # Reference evaluated at the kernel's MXU input precision (bf16 inputs,
    # f32 accumulation); remaining deltas are bf16 rounding of the per-edge
    # products/messages inside the MXU plus summation order.
    q_r = q.astype(jnp.bfloat16).astype(jnp.float32)
    k_r = k.astype(jnp.bfloat16).astype(jnp.float32)
    v_r = v.astype(jnp.bfloat16).astype(jnp.float32)
    ref = _reference_sparse_attention(q_r, k_r, v_r, edge_index, num_heads)
    assert jnp.allclose(out, ref, atol=2e-2, rtol=2e-2), "mismatch vs reference"

    print("KERNEL_OK")
</pallas_src>

<mosaic_0001>
module attributes {stable_mosaic.version = 11 : i64} {
  func.func @_sparse_attn_kernel(%arg0: i32, %arg1: memref<256x1xi32, #tpu.memory_space<vmem>>, %arg2: memref<256x1xi32, #tpu.memory_space<vmem>>, %arg3: memref<128x128xbf16, #tpu.memory_space<vmem>>, %arg4: memref<128x256xbf16, #tpu.memory_space<vmem>>, %arg5: memref<128x128xbf16, #tpu.memory_space<vmem>>, %arg6: memref<128x128xf32, #tpu.memory_space<vmem>>, %arg7: memref<128x256xf32, #tpu.memory_space<vmem>>) attributes {dimension_semantics = [#tpu.dimension_semantics<arbitrary>], iteration_bounds = array<i64: 2>, scalar_prefetch = 0 : i64, scratch_operands = 1 : i64, tpu.core_type = #tpu.core_type<tc>, window_params = [{transform_indices = @transform_0, window_bounds = array<i64: 256, 1>}, {transform_indices = @transform_1, window_bounds = array<i64: 256, 1>}, {pipeline_mode = #tpu.pipeline_mode<synchronous>, transform_indices = @transform_2, window_bounds = array<i64: 128, 128>}, {pipeline_mode = #tpu.pipeline_mode<synchronous>, transform_indices = @transform_3, window_bounds = array<i64: 128, 256>}, {pipeline_mode = #tpu.pipeline_mode<synchronous>, transform_indices = @transform_4, window_bounds = array<i64: 128, 128>}, {pipeline_mode = #tpu.pipeline_mode<synchronous>, transform_indices = @transform_5, window_bounds = array<i64: 128, 128>}]} {
    %c0_i32 = arith.constant 0 : i32
    %0 = arith.cmpi eq, %arg0, %c0_i32 : i32
    %1 = arith.extui %0 : i1 to i32
    %c0_i32_0 = arith.constant 0 : i32
    %2 = arith.cmpi ne, %1, %c0_i32_0 : i32
    scf.if %2 {
      %cst_21 = arith.constant 0.000000e+00 : f32
      %43 = vector.broadcast %cst_21 : f32 to vector<128x256xf32>
      %c0_22 = arith.constant 0 : index
      %c0_23 = arith.constant 0 : index
      %44 = vector.load %arg7[%c0_22, %c0_23] : memref<128x256xf32, #tpu.memory_space<vmem>>, vector<128x256xf32>
      tpu.vector_store %arg7[%c0_22, %c0_23], %43 {strides = array<i32>} : memref<128x256xf32, #tpu.memory_space<vmem>>, vector<128x256xf32>,
    } else {
    }
    %3 = tpu.iota {dimensions = array<i32: 1>} : vector<256x128xi32>
    %c0 = arith.constant 0 : index
    %c0_1 = arith.constant 0 : index
    %4 = vector.load %arg1[%c0, %c0_1] : memref<256x1xi32, #tpu.memory_space<vmem>>, vector<256x1xi32>
    %5 = vector.broadcast %4 : vector<256x1xi32> to vector<256x128xi32>
    %6 = arith.cmpi eq, %5, %3 : vector<256x128xi32>
    %7 = arith.extui %6 : vector<256x128xi1> to vector<256x128xi32>
    %8 = arith.sitofp %7 : vector<256x128xi32> to vector<256x128xf32>
    %9 = arith.truncf %8 : vector<256x128xf32> to vector<256x128xbf16>
    %c0_2 = arith.constant 0 : index
    %c0_3 = arith.constant 0 : index
    %10 = vector.load %arg2[%c0_2, %c0_3] : memref<256x1xi32, #tpu.memory_space<vmem>>, vector<256x1xi32>
    %11 = vector.broadcast %10 : vector<256x1xi32> to vector<256x128xi32>
    %12 = arith.cmpi eq, %11, %3 : vector<256x128xi32>
    %13 = arith.extui %12 : vector<256x128xi1> to vector<256x128xi32>
    %14 = arith.sitofp %13 : vector<256x128xi32> to vector<256x128xf32>
    %15 = arith.truncf %14 : vector<256x128xf32> to vector<256x128xbf16>
    %c0_4 = arith.constant 0 : index
    %c0_5 = arith.constant 0 : index
    %16 = vector.load %arg4[%c0_4, %c0_5] : memref<128x256xbf16, #tpu.memory_space<vmem>>, vector<128x256xbf16>
    %cst = arith.constant dense<0.000000e+00> : vector<256x256xf32>
    %17 = tpu.matmul %9, %16, %cst {dimension_numbers = #tpu.dot_dimension_numbers<[1], [0], [0], [1], [0, 0, 1, 1], [], []>} : vector<256x128xbf16>, vector<128x256xbf16>, vector<256x256xf32> -> vector<256x256xf32>
    %c0_6 = arith.constant 0 : index
    %c0_7 = arith.constant 0 : index
    %18 = vector.load %arg3[%c0_6, %c0_7] : memref<128x128xbf16, #tpu.memory_space<vmem>>, vector<128x128xbf16>
    %cst_8 = arith.constant dense<0.000000e+00> : vector<256x128xf32>
    %19 = tpu.matmul %15, %18, %cst_8 {dimension_numbers = #tpu.dot_dimension_numbers<[1], [0], [0], [1], [0, 0, 1, 1], [], []>} : vector<256x128xbf16>, vector<128x128xbf16>, vector<256x128xf32> -> vector<256x128xf32>
    %20 = vector.extract_strided_slice %17 {offsets = [0, 0], sizes = [256, 128], strides = [1, 1]} : vector<256x256xf32> to vector<256x128xf32>
    %21 = vector.extract_strided_slice %17 {offsets = [0, 128], sizes = [256, 128], strides = [1, 1]} : vector<256x256xf32> to vector<256x128xf32>
    %22 = arith.mulf %20, %19 : vector<256x128xf32>
    %cst_9 = arith.constant 0.353553385 : f32
    %23 = vector.broadcast %cst_9 : f32 to vector<256x128xf32>
    %24 = arith.mulf %22, %23 : vector<256x128xf32>
    %25 = arith.truncf %24 : vector<256x128xf32> to vector<256x128xbf16>
    %c0_10 = arith.constant 0 : index
    %c0_11 = arith.constant 0 : index
    %26 = vector.load %arg5[%c0_10, %c0_11] : memref<128x128xbf16, #tpu.memory_space<vmem>>, vector<128x128xbf16>
    %cst_12 = arith.constant dense<0.000000e+00> : vector<256x128xf32>
    %27 = tpu.matmul %25, %26, %cst_12 {dimension_numbers = #tpu.dot_dimension_numbers<[1], [0], [0], [1], [0, 0, 1, 1], [], []>} : vector<256x128xbf16>, vector<128x128xbf16>, vector<256x128xf32> -> vector<256x128xf32>
    %cst_13 = arith.constant -5.000000e+00 : f32
    %cst_14 = arith.constant 5.000000e+00 : f32
    %28 = vector.broadcast %cst_13 : f32 to vector<256x128xf32>
    %29 = arith.maximumf %28, %27 : vector<256x128xf32>
    %30 = vector.broadcast %cst_14 : f32 to vector<256x128xf32>
    %31 = arith.minimumf %30, %29 : vector<256x128xf32>
    %32 = math.exp %31 : vector<256x128xf32>
    %33 = arith.mulf %21, %32 : vector<256x128xf32>
    %34 = tpu.concatenate %33, %32 in 1 : vector<256x128xf32>, vector<256x128xf32> -> vector<256x256xf32>
    %35 = arith.truncf %34 : vector<256x256xf32> to vector<256x256xbf16>
    %c0_15 = arith.constant 0 : index
    %c0_16 = arith.constant 0 : index
    %36 = vector.load %arg7[%c0_15, %c0_16] : memref<128x256xf32, #tpu.memory_space<vmem>>, vector<128x256xf32>
    %cst_17 = arith.constant dense<0.000000e+00> : vector<128x256xf32>
    %37 = tpu.matmul %15, %35, %cst_17 {dimension_numbers = #tpu.dot_dimension_numbers<[0], [0], [1], [1], [0, 1, 1, 1], [], []>} : vector<256x128xbf16>, vector<256x256xbf16>, vector<128x256xf32> -> vector<128x256xf32>
    %38 = arith.addf %36, %37 : vector<128x256xf32>
    %c0_18 = arith.constant 0 : index
    %c0_19 = arith.constant 0 : index
    %39 = vector.load %arg7[%c0_18, %c0_19] : memref<128x256xf32, #tpu.memory_space<vmem>>, vector<128x256xf32>
    tpu.vector_store %arg7[%c0_18, %c0_19], %38 {strides = array<i32>} : memref<128x256xf32, #tpu.memory_space<vmem>>, vector<128x256xf32>,
    %c1_i32 = arith.constant 1 : i32
    %40 = arith.cmpi eq, %arg0, %c1_i32 : i32
    %41 = arith.extui %40 : i1 to i32
    %c0_i32_20 = arith.constant 0 : i32
    %42 = arith.cmpi ne, %41, %c0_i32_20 : i32
    scf.if %42 {
      %c0_21 = arith.constant 0 : index
      %c0_22 = arith.constant 0 : index
      %43 = vector.load %arg7[%c0_21, %c0_22] : memref<128x256xf32, #tpu.memory_space<vmem>>, vector<128x128xf32>
      %c0_23 = arith.constant 0 : index
      %c128 = arith.constant 128 : index
      %44 = vector.load %arg7[%c0_23, %c128] : memref<128x256xf32, #tpu.memory_space<vmem>>, vector<128x128xf32>
      %cst_24 = arith.constant 9.99999997E-7 : f32
      %45 = vector.broadcast %cst_24 : f32 to vector<128x128xf32>
      %46 = arith.addf %44, %45 : vector<128x128xf32>
      %47 = arith.divf %43, %46 : vector<128x128xf32>
      %c0_25 = arith.constant 0 : index
      %c0_26 = arith.constant 0 : index
      %48 = vector.load %arg6[%c0_25, %c0_26] : memref<128x128xf32, #tpu.memory_space<vmem>>, vector<128x128xf32>
      tpu.vector_store %arg6[%c0_25, %c0_26], %47 {strides = array<i32>} : memref<128x128xf32, #tpu.memory_space<vmem>>, vector<128x128xf32>,
    } else {
    }
    return
  }
  func.func @transform_0(%arg0: i32) -> (i32, i32) {
    %c0_i32 = arith.constant 0 : i32
    %c0_i32_0 = arith.constant 0 : i32
    return %arg0, %c0_i32 : i32, i32
  }
  func.func @transform_1(%arg0: i32) -> (i32, i32) {
    %c0_i32 = arith.constant 0 : i32
    %c0_i32_0 = arith.constant 0 : i32
    return %arg0, %c0_i32 : i32, i32
  }
  func.func @transform_2(%arg0: i32) -> (i32, i32) {
    %c0_i32 = arith.constant 0 : i32
    %c0_i32_0 = arith.constant 0 : i32
    %c0_i32_1 = arith.constant 0 : i32
    return %c0_i32, %c0_i32_0 : i32, i32
  }
  func.func @transform_3(%arg0: i32) -> (i32, i32) {
    %c0_i32 = arith.constant 0 : i32
    %c0_i32_0 = arith.constant 0 : i32
    %c0_i32_1 = arith.constant 0 : i32
    return %c0_i32, %c0_i32_0 : i32, i32
  }
  func.func @transform_4(%arg0: i32) -> (i32, i32) {
    %c0_i32 = arith.constant 0 : i32
    %c0_i32_0 = arith.constant 0 : i32
    %c0_i32_1 = arith.constant 0 : i32
    return %c0_i32, %c0_i32_0 : i32, i32
  }
  func.func @transform_5(%arg0: i32) -> (i32, i32) {
    %c0_i32 = arith.constant 0 : i32
    %c0_i32_0 = arith.constant 0 : i32
    %c0_i32_1 = arith.constant 0 : i32
    return %c0_i32, %c0_i32_0 : i32, i32
  }
}

</mosaic_0001>

<bundles_post_ra>
// kernel: tpu_custom_call.1
= control target key start
LH: loop header
LB: loop body
LE: loop exit
PB: predicated region body
PF: predicated region fallthrough
CT: control target
= control target key end

     0   :  { %10 = vsyncpa [#allocation4], 0  ;;  %s2764_s18 = smov 0   ;;  %s3267_s0 = inlined_call_operand.vmem [shape: s32[512,1], index: 0, kind: input, shape index: {}]   ;;  %s3268_s1 = inlined_call_operand.vmem [shape: s32[512,1], index: 1, kind: input, shape index: {}]   ;;  %s3269_s2 = inlined_call_operand.vmem [shape: bf16[128,128], index: 2, kind: input, shape index: {}]   ;;  %s3270_s3 = inlined_call_operand.vmem [shape: bf16[128,256], index: 3, kind: input, shape index: {}]   ;;  %s3271_s4 = inlined_call_operand.vmem [shape: bf16[128,128], index: 4, kind: input, shape index: {}]   ;;  %s3272_s5 = inlined_call_operand.hbm [shape: f32[128,128], index: 5, kind: output, shape index: {}]  }
   0x1 LB: > { %s2770_s19 = sadd.s32 4294967295, %s2725_s18   ;;  %p2169_p0 = scmp.ge.s32.totalorder %s2725_s18, 1  ;;  %s2725_s18 = sphi %s2764_s18, %s16_s18  }
   0x2   : > { %p195_p1 = scmp.lt.s32.totalorder %s2725_s18, 3 }
   0x4   : > { %p196_p2 = pnand %p2169_p0, %p195_p1 }
   0x5   : > { %s2170_s20 = sshll.u32 (!%p196_p2), %s2770_s19, 5  ;;  %p2174_p4 = scmp.ne.s32.totalorder (!%p196_p2), %s2770_s19, 0 }
   0x6   : > { %199 = sbr.rel (%p196_p2) target bundleno = 1050 (0x41a), region = 40  ;;  %p224_p3 = scmp.lt.s32.totalorder (!%p196_p2), %s2170_s20, 63 }
   0xb   : > { %s3274_s20 = smov (!%p224_p3, %s2170_s20), 63  ;;  %239 = sbr.rel (%p2174_p4) target bundleno = 33 (0x21), region = 44 }
   0xc   : > { %s2171_s21 = sshll.u32 %s3274_s20, 3 }
   0xd   : > { %s2778_s24 = scalar_lea.vmem %s3267_s0, %s2171_s21  ;;  %s2783_s27 = scalar_lea.vmem %s3268_s1, %s2171_s21 }
  0x10   : > { %v2727_v0 = vmov 0.0  }
  0x11   : > { %240 = vst [vmem:[#allocation2 + $0xb0] sm:$0xff] %v2727_v0  ;;  %241 = vst [vmem:[#allocation2] sm:$0xff] %v2727_v0 }
  0x12   : > { %242 = vst [vmem:[#allocation2 + $0xd8] sm:$0xff] %v2727_v0  ;;  %243 = vst [vmem:[#allocation2 + $0x18] sm:$0xff] %v2727_v0 }
  0x13   : > { %244 = vst [vmem:[#allocation2 + $0x50] sm:$0xff] %v2727_v0  ;;  %245 = vst [vmem:[#allocation2 + $0x68] sm:$0xff] %v2727_v0 }
  0x14   : > { %246 = vst [vmem:[#allocation2 + $0x30] sm:$0xff] %v2727_v0  ;;  %247 = vst [vmem:[#allocation2 + $0x48] sm:$0xff] %v2727_v0 }
  0x15   : > { %248 = vst [vmem:[#allocation2 + $0x80] sm:$0xff] %v2727_v0  ;;  %249 = vst [vmem:[#allocation2 + $0x88] sm:$0xff] %v2727_v0 }
  0x16   : > { %250 = vst [vmem:[#allocation2 + $0xe8] sm:$0xff] %v2727_v0  ;;  %251 = vst [vmem:[#allocation2 + $0xb8] sm:$0xff] %v2727_v0 }
  0x17   : > { %252 = vst [vmem:[#allocation2 + $0x60] sm:$0xff] %v2727_v0  ;;  %253 = vst [vmem:[#allocation2 + $0xf0] sm:$0xff] %v2727_v0 }
  0x18   : > { %254 = vst [vmem:[#allocation2 + $0x8] sm:$0xff] %v2727_v0  ;;  %255 = vst [vmem:[#allocation2 + $0x78] sm:$0xff] %v2727_v0 }
  0x19   : > { %256 = vst [vmem:[#allocation2 + $0x38] sm:$0xff] %v2727_v0  ;;  %257 = vst [vmem:[#allocation2 + $0x58] sm:$0xff] %v2727_v0 }
  0x1a   : > { %258 = vst [vmem:[#allocation2 + $0x40] sm:$0xff] %v2727_v0  ;;  %259 = vst [vmem:[#allocation2 + $0xc8] sm:$0xff] %v2727_v0 }
  0x1b   : > { %260 = vst [vmem:[#allocation2 + $0xe0] sm:$0xff] %v2727_v0  ;;  %261 = vst [vmem:[#allocation2 + $0x90] sm:$0xff] %v2727_v0 }
  0x1c   : > { %262 = vst [vmem:[#allocation2 + $0x70] sm:$0xff] %v2727_v0  ;;  %263 = vst [vmem:[#allocation2 + $0xc0] sm:$0xff] %v2727_v0 }
  0x1d   : > { %264 = vst [vmem:[#allocation2 + $0xa8] sm:$0xff] %v2727_v0  ;;  %265 = vst [vmem:[#allocation2 + $0xd0] sm:$0xff] %v2727_v0 }
  0x1e   : > { %266 = vst [vmem:[#allocation2 + $0x10] sm:$0xff] %v2727_v0  ;;  %267 = vst [vmem:[#allocation2 + $0x28] sm:$0xff] %v2727_v0 }
  0x1f   : > { %268 = vst [vmem:[#allocation2 + $0xa0] sm:$0xff] %v2727_v0  ;;  %269 = vst [vmem:[#allocation2 + $0xf8] sm:$0xff] %v2727_v0 }
  0x20   : > { %270 = vst [vmem:[#allocation2 + $0x20] sm:$0xff] %v2727_v0  ;;  %271 = vst [vmem:[#allocation2 + $0x98] sm:$0xff] %v2727_v0 }
  0x21 PF: > { %v276_v1 = vld [vmem:[%s2778_s24 + $0x10] sm:$0xff]  ;;  %v274_v2 = vld [vmem:[%s2778_s24] sm:$0xff]  ;;  %v2728_v3 = vmov 0   ;;  %v277_v4 = vld [vmem:[%s2778_s24 + $0x18] sm:$0xff]  ;;  %p2367_p5 = scmp.ne.s32.totalorder %s2770_s19, 1 }
  0x22   : > { %2554 = vset.pattern.permute.xlu1 %v2728_v3  ;;  %2553 = vset.pattern.permute.xlu0 %v2728_v3  ;;  %v275_v5 = vld [vmem:[%s2778_s24 + $0x8] sm:$0xff]  ;;  %v298_v7 = vld [vmem:[%s2778_s24 + $0xc0] sm:$0xff]  ;;  %v301_v10 = vld [vmem:[%s2778_s24 + $0xd8] sm:$0xff] }
  0x23   : > { %313 = vperm.xlu1 %2554, %v276_v1   ;;  %307 = vperm.xlu0 %2553, %v274_v2   ;;  %v299_v6 = vld [vmem:[%s2778_s24 + $0xc8] sm:$0xff]  ;;  %v278_v9 = vld [vmem:[%s2778_s24 + $0x20] sm:$0xff]  ;;  %v300_v11 = vld [vmem:[%s2778_s24 + $0xd0] sm:$0xff] }
  0x24   : > { %882 = vmatprep.mubr.bf16.mxu0 %v2728_v3  ;;  %1002 = vmatprep.mubr.bf16.mxu1 %v2728_v3  ;;  %v279_v8 = vld [vmem:[%s2778_s24 + $0x28] sm:$0xff]  ;;  %v2555_v12 = vld [vmem:[%s3270_s3 + $0x74] ss:$8 sps:$4 sm:$0xff]   ;;  %v2557_v13 = vld [vmem:[%s3270_s3 + $0x70] ss:$8 sps:$4 sm:$0xff]  }
  0x25   : > { %v281_v14 = vld [vmem:[%s2778_s24 + $0x38] sm:$0xff]  ;;  %v280_v15 = vld [vmem:[%s2778_s24 + $0x30] sm:$0xff]  ;;  %850 = vmatprep.subr.bf16.mxu0 %v2555_v12  ;;  %2516 = vmatprep.subr.bf16.mxu1 %v2555_v12  ;;  %v2558_v16 = vld [vmem:[%s3270_s3 + $0x64] ss:$8 sps:$4 sm:$0xff]  }
  0x26   : > { %851 = vmatpush1.bf16.msra.mxu0 %v2557_v13  ;;  %2524 = vmatpush1.bf16.msra.mxu1 %v2557_v13  ;;  %v2560_v17 = vld [vmem:[%s3270_s3 + $0x60] ss:$8 sps:$4 sm:$0xff]   ;;  %v2561_v18 = vld [vmem:[%s3270_s3 + $0x54] ss:$8 sps:$4 sm:$0xff]   ;;  %v2563_v21 = vld [vmem:[%s3270_s3 + $0x50] ss:$8 sps:$4 sm:$0xff]  }
  0x27   : > { %316 = vperm.xlu1 %2554, %v277_v4   ;;  %310 = vperm.xlu0 %2553, %v275_v5   ;;  %v303_v19 = vld [vmem:[%s2778_s24 + $0xe8] sm:$0xff]  ;;  %v302_v20 = vld [vmem:[%s2778_s24 + $0xe0] sm:$0xff]  ;;  %v2567_v26 = vld [vmem:[%s3270_s3 + $0x34] ss:$8 sps:$4 sm:$0xff]  }
  0x28   : > { %852 = vmatprep.subr.bf16.mxu0 %v2558_v16  ;;  %2517 = vmatprep.subr.bf16.mxu1 %v2558_v16  ;;  %v2564_v22 = vld [vmem:[%s3270_s3 + $0x44] ss:$8 sps:$4 sm:$0xff]   ;;  %v2566_v25 = vld [vmem:[%s3270_s3 + $0x40] ss:$8 sps:$4 sm:$0xff]   ;;  %v305_v27 = vld [vmem:[%s2778_s24 + $0xf8] sm:$0xff] }
  0x29   : > { %v283_v23 = vld [vmem:[%s2778_s24 + $0x48] sm:$0xff]  ;;  %v282_v24 = vld [vmem:[%s2778_s24 + $0x40] sm:$0xff]  ;;  %v304_v28 = vld [vmem:[%s2778_s24 + $0xf0] sm:$0xff] }
  0x2a   : > { %853 = vmatpush1.bf16.msra.mxu0 %v2560_v17  ;;  %2525 = vmatpush1.bf16.msra.mxu1 %v2560_v17  ;;  %v2569_v29 = vld [vmem:[%s3270_s3 + $0x30] ss:$8 sps:$4 sm:$0xff]   ;;  %v2570_v30 = vld [vmem:[%s3270_s3 + $0x24] ss:$8 sps:$4 sm:$0xff]   ;;  %v2572_v33 = vld [vmem:[%s3270_s3 + $0x20] ss:$8 sps:$4 sm:$0xff]  }
  0x2b   : > { %382 = vperm.xlu1 %2554, %v299_v6   ;;  %379 = vperm.xlu0 %2553, %v298_v7   ;;  %v285_v31 = vld [vmem:[%s2778_s24 + $0x58] sm:$0xff]  ;;  %v284_v32 = vld [vmem:[%s2778_s24 + $0x50] sm:$0xff]  ;;  %v515_v34 = vld [vmem:[%s2783_s27 + $0x8] sm:$0xff] }
  0x2c   : > { %854 = vmatprep.subr.bf16.mxu0 %v2561_v18  ;;  %2518 = vmatprep.subr.bf16.mxu1 %v2561_v18  ;;  %v514_v35 = vld [vmem:[%s2783_s27] sm:$0xff]  ;;  %v2573_v36 = vld [vmem:[%s3270_s3 + $0x14] ss:$8 sps:$4 sm:$0xff]   ;;  %v2575_v37 = vld [vmem:[%s3270_s3 + $0x10] ss:$8 sps:$4 sm:$0xff]   ;;  %v272_v18 = vlaneseq }
  0x2d   : > { %v2576_v38 = vld [vmem:[%s3270_s3 + $0x4] ss:$8 sps:$4 sm:$0xff]   ;;  %v517_v39 = vld [vmem:[%s2783_s27 + $0x18] sm:$0xff]  ;;  %v516_v40 = vld [vmem:[%s2783_s27 + $0x10] sm:$0xff] }
  0x2e   : > { %855 = vmatpush1.bf16.msra.mxu0 %v2563_v21  ;;  %2526 = vmatpush1.bf16.msra.mxu1 %v2563_v21  ;;  %v2578_v41 = vld [vmem:[%s3270_s3] ss:$8 sps:$4 sm:$0xff]   ;;  %v2865_v42 = vld [vmem:[%s3269_s2 + $0x38] sm:$0xff]   ;;  %v520_v48 = vld [vmem:[%s2783_s27 + $0x30] sm:$0xff] }
  0x2f   : > { %322 = vperm.xlu1 %2554, %v279_v8   ;;  %319 = vperm.xlu0 %2553, %v278_v9   ;;  %v287_v43 = vld [vmem:[%s2778_s24 + $0x68] sm:$0xff]  ;;  %v286_v44 = vld [vmem:[%s2778_s24 + $0x60] sm:$0xff]  ;;  %v521_v47 = vld [vmem:[%s2783_s27 + $0x38] sm:$0xff] }
  0x30   : > { %856 = vmatprep.subr.bf16.mxu0 %v2564_v22  ;;  %2519 = vmatprep.subr.bf16.mxu1 %v2564_v22  ;;  %v519_v45 = vld [vmem:[%s2783_s27 + $0x28] sm:$0xff]  ;;  %v518_v46 = vld [vmem:[%s2783_s27 + $0x20] sm:$0xff]  ;;  %v289_v49 = vld [vmem:[%s2778_s24 + $0x78] sm:$0xff] }
  0x31   : > { %v288_v50 = vld [vmem:[%s2778_s24 + $0x70] sm:$0xff]  ;;  %v523_v51 = vld [vmem:[%s2783_s27 + $0x48] sm:$0xff]  ;;  %v522_v52 = vld [vmem:[%s2783_s27 + $0x40] sm:$0xff] }
  0x32   : > { %857 = vmatpush1.bf16.msra.mxu0 %v2566_v25  ;;  %2527 = vmatpush1.bf16.msra.mxu1 %v2566_v25  ;;  %v525_v53 = vld [vmem:[%s2783_s27 + $0x58] sm:$0xff]  ;;  %v524_v54 = vld [vmem:[%s2783_s27 + $0x50] sm:$0xff]  ;;  %v291_v55 = vld [vmem:[%s2778_s24 + $0x88] sm:$0xff] }
  0x33   : > { %388 = vperm.xlu1 %2554, %v301_v10   ;;  %385 = vperm.xlu0 %2553, %v300_v11   ;;  %v290_v56 = vld [vmem:[%s2778_s24 + $0x80] sm:$0xff]  ;;  %v527_v57 = vld [vmem:[%s2783_s27 + $0x68] sm:$0xff]  ;;  %v529_v59 = vld [vmem:[%s2783_s27 + $0x78] sm:$0xff] }
  0x34   : > { %858 = vmatprep.subr.bf16.mxu0 %v2567_v26  ;;  %2520 = vmatprep.subr.bf16.mxu1 %v2567_v26  ;;  %v526_v58 = vld [vmem:[%s2783_s27 + $0x60] sm:$0xff]  ;;  %v528_v60 = vld [vmem:[%s2783_s27 + $0x70] sm:$0xff]  ;;  %v293_v61 = vld [vmem:[%s2778_s24 + $0x98] sm:$0xff]  ;;  %v2729_v26 = vmov 1.0|1.0  }
  0x35   : > { %v292_v62 = vld [vmem:[%s2778_s24 + $0x90] sm:$0xff]  ;;  %v531_v63 = vld [vmem:[%s2783_s27 + $0x88] sm:$0xff]  ;;  %v530_v0 = vld [vmem:[%s2783_s27 + $0x80] sm:$0xff] }
  0x36   : > { %859 = vmatpush1.bf16.msra.mxu0 %v2569_v29  ;;  %2528 = vmatpush1.bf16.msra.mxu1 %v2569_v29  ;;  %v533_v1 = vld [vmem:[%s2783_s27 + $0x98] sm:$0xff]  ;;  %v532_v2 = vld [vmem:[%s2783_s27 + $0x90] sm:$0xff]  ;;  %v295_v4 = vld [vmem:[%s2778_s24 + $0xa8] sm:$0xff] }
  0x37   : > { %328 = vperm.xlu1 %2554, %v281_v14   ;;  %325 = vperm.xlu0 %2553, %v280_v15   ;;  %v294_v5 = vld [vmem:[%s2778_s24 + $0xa0] sm:$0xff]  ;;  %v535_v6 = vld [vmem:[%s2783_s27 + $0xa8] sm:$0xff]  ;;  %v537_v8 = vld [vmem:[%s2783_s27 + $0xb8] sm:$0xff] }
  0x38   : > { %860 = vmatprep.subr.bf16.mxu0 %v2570_v30  ;;  %2521 = vmatprep.subr.bf16.mxu1 %v2570_v30  ;;  %v534_v7 = vld [vmem:[%s2783_s27 + $0xa0] sm:$0xff]  ;;  %v536_v9 = vld [vmem:[%s2783_s27 + $0xb0] sm:$0xff]  ;;  %v297_v10 = vld [vmem:[%s2778_s24 + $0xb8] sm:$0xff] }
  0x39   : > { %v296_v11 = vld [vmem:[%s2778_s24 + $0xb0] sm:$0xff]  ;;  %v539_v12 = vld [vmem:[%s2783_s27 + $0xc8] sm:$0xff]  ;;  %v538_v13 = vld [vmem:[%s2783_s27 + $0xc0] sm:$0xff] }
  0x3a   : > { %861 = vmatpush1.bf16.msra.mxu0 %v2572_v33  ;;  %2529 = vmatpush1.bf16.msra.mxu1 %v2572_v33  ;;  %v541_v14 = vld [vmem:[%s2783_s27 + $0xd8] sm:$0xff]  ;;  %v540_v15 = vld [vmem:[%s2783_s27 + $0xd0] sm:$0xff]  ;;  %v543_v16 = vld [vmem:[%s2783_s27 + $0xe8] sm:$0xff] }
  0x3b   : > { %394 = vperm.xlu1 %2554, %v303_v19   ;;  %391 = vperm.xlu0 %2553, %v302_v20   ;;  %v542_v17 = vld [vmem:[%s2783_s27 + $0xe0] sm:$0xff]  ;;  %v545_v19 = vld [vmem:[%s2783_s27 + $0xf8] sm:$0xff]  ;;  %v544_v20 = vld [vmem:[%s2783_s27 + $0xf0] sm:$0xff] }
  0x3c   : > { %862 = vmatprep.subr.bf16.mxu0 %v2573_v36  ;;  %2522 = vmatprep.subr.bf16.mxu1 %v2573_v36  ;;  %v2580_v29 = vld [vmem:[%s3269_s2 + $0x30] sm:$0xff]  }
  0x3e   : > { %863 = vmatpush1.bf16.msra.mxu0 %v2575_v37  ;;  %2530 = vmatpush1.bf16.msra.mxu1 %v2575_v37 }
  0x3f   : > { %334 = vperm.xlu1 %2554, %v283_v23   ;;  %331 = vperm.xlu0 %2553, %v282_v24   ;;  %v2908_v23 = vand.u32 127, %v272_v18 }
  0x40   : > { %864 = vmatprep.subr.bf16.mxu0 %v2576_v38  ;;  %2523 = vmatprep.subr.bf16.mxu1 %v2576_v38  ;;  %v2583_v38 = vld [vmem:[%s3269_s2 + $0x18] sm:$0xff]  }
  0x42   : > { %865 = vmatpush1.bf16.msra.mxu0 %v2578_v41  ;;  %2531 = vmatpush1.bf16.msra.mxu1 %v2578_v41  ;;  %v2584_v41 = vld [vmem:[%s3269_s2 + $0x10] sm:$0xff]  }
  0x43   : > { %400 = vperm.xlu1 %2554, %v305_v27   ;;  %397 = vperm.xlu0 %2553, %v304_v28  }
  0x44   : > { %2420 = vmatprep.subr.bf16.mxu1 %v2865_v42 }
  0x47   : > { %340 = vperm.xlu1 %2554, %v285_v31   ;;  %337 = vperm.xlu0 %2553, %v284_v32   ;;  %v2581_v32 = vld [vmem:[%s3269_s2 + $0x28] sm:$0xff]  }
  0x4b   : > { %550 = vperm.xlu1 %2554, %v515_v34   ;;  %547 = vperm.xlu0 %2553, %v514_v35   ;;  %v2582_v35 = vld [vmem:[%s3269_s2 + $0x20] sm:$0xff]  }
  0x4f   : > { %556 = vperm.xlu1 %2554, %v517_v39   ;;  %553 = vperm.xlu0 %2553, %v516_v40  }
  0x53   : > { %346 = vperm.xlu1 %2554, %v287_v43   ;;  %343 = vperm.xlu0 %2553, %v286_v44   ;;  %v2585_v44 = vld [vmem:[%s3269_s2 + $0x8] sm:$0xff]  }
  0x57   : > { %562 = vperm.xlu1 %2554, %v519_v45   ;;  %559 = vperm.xlu0 %2553, %v518_v46  }
  0x5b   : > { %568 = vperm.xlu1 %2554, %v521_v47   ;;  %565 = vperm.xlu0 %2553, %v520_v48   ;;  %v2586_v47 = vld [vmem:[%s3269_s2] sm:$0xff]  }
  0x5f   : > { %352 = vperm.xlu1 %2554, %v289_v49   ;;  %349 = vperm.xlu0 %2553, %v288_v50  }
  0x63   : > { %574 = vperm.xlu1 %2554, %v523_v51   ;;  %571 = vperm.xlu0 %2553, %v522_v52   ;;  %v2730_v52 = vmov 0.0  }
  0x67   : > { %580 = vperm.xlu1 %2554, %v525_v53   ;;  %577 = vperm.xlu0 %2553, %v524_v54  }
  0x6b   : > { %358 = vperm.xlu1 %2554, %v291_v55   ;;  %355 = vperm.xlu0 %2553, %v290_v56  }
  0x6f   : > { %586 = vperm.xlu1 %2554, %v527_v57   ;;  %583 = vperm.xlu0 %2553, %v526_v58  }
  0x73   : > { %592 = vperm.xlu1 %2554, %v529_v59   ;;  %589 = vperm.xlu0 %2553, %v528_v60  }
  0x77   : > { %364 = vperm.xlu1 %2554, %v293_v61   ;;  %361 = vperm.xlu0 %2553, %v292_v62  }
  0x7b   : > { %598 = vperm.xlu1 %2554, %v531_v63   ;;  %595 = vperm.xlu0 %2553, %v530_v0  }
  0x7f   : > { %604 = vperm.xlu1 %2554, %v533_v1   ;;  %601 = vperm.xlu0 %2553, %v532_v2  }
  0x83   : > { %370 = vperm.xlu1 %2554, %v295_v4   ;;  %367 = vperm.xlu0 %2553, %v294_v5  }
  0x87   : > { %610 = vperm.xlu1 %2554, %v535_v6   ;;  %607 = vperm.xlu0 %2553, %v534_v7  }
  0x8b   : > { %616 = vperm.xlu1 %2554, %v537_v8   ;;  %613 = vperm.xlu0 %2553, %v536_v9  }
  0x8f   : > { %376 = vperm.xlu1 %2554, %v297_v10   ;;  %373 = vperm.xlu0 %2553, %v296_v11  }
  0x93   : > { %622 = vperm.xlu1 %2554, %v539_v12   ;;  %619 = vperm.xlu0 %2553, %v538_v13  }
  0x97   : > { %628 = vperm.xlu1 %2554, %v541_v14   ;;  %625 = vperm.xlu0 %2553, %v540_v15  }
  0x9b   : > { %634 = vperm.xlu1 %2554, %v543_v16   ;;  %631 = vperm.xlu0 %2553, %v542_v17  }
  0x9e   : > { %v314_v21 = vpop.permute.xlu1 %313  ;;  %v308_v22 = vpop.permute.xlu0 %307 }
  0x9f   : > { %640 = vperm.xlu1 %2554, %v545_v19   ;;  %637 = vperm.xlu0 %2553, %v544_v20   ;;  %vm402_vm1 = vcmp.eq.s32.totalorder %v308_v22, %v2908_v23  ;;  %vm404_vm7 = vcmp.eq.s32.totalorder %v314_v21, %v2908_v23 }
  0xa2   : > { %v317_v24 = vpop.permute.xlu1 %316  ;;  %v311_v25 = vpop.permute.xlu0 %310 }
  0xa3   : > { %vm403_vm0 = vcmp.eq.s32.totalorder %v311_v25, %v2908_v23  ;;  %vm405_vm6 = vcmp.eq.s32.totalorder %v317_v24, %v2908_v23 }
  0xa4   : > { %vm2255_vm2 = vmpackc.low %vm403_vm0, %vm402_vm1 }
  0xa5   : > { %2256 = vmatmul.mubr.msk.bf16.vlgmr.msra.gmra.mxu0 %vm2255_vm2, %v2729_v26  ;;  %vm2257_vm8 = vmpackc.low %vm405_vm6, %vm404_vm7 }
  0xa6   : > { %v383_v27 = vpop.permute.xlu1 %382  ;;  %v380_v28 = vpop.permute.xlu0 %379  ;;  %892 = vmatprep.mubr.bf16.mxu0 %v2728_v3 }
  0xa7   : > { %vm427_vm3 = vcmp.eq.s32.totalorder %v383_v27, %v2908_v23  ;;  %vm426_vm4 = vcmp.eq.s32.totalorder %v380_v28, %v2908_v23 }
  0xa8   : > { %vm2279_vm5 = vmpackc.low %vm427_vm3, %vm426_vm4 }
  0xa9   : > { %2280 = vmatmul.mubr.msk.bf16.vlgmr.msra.gmra.mxu1 %vm2279_vm5, %v2729_v26 }
  0xaa   : > { %v323_v30 = vpop.permute.xlu1 %322  ;;  %v320_v31 = vpop.permute.xlu0 %319  ;;  %2421 = vmatpush3.bf16.msra.mxu1 %v2865_v42  ;;  %1012 = vmatprep.mubr.bf16.mxu1 %v2728_v3 }
  0xab   : > { %2422 = vmatprep.subr.bf16.mxu1 %v2580_v29  ;;  %vm407_vm12 = vcmp.eq.s32.totalorder %v323_v30, %v2908_v23  ;;  %vm406_vm13 = vcmp.eq.s32.totalorder %v320_v31, %v2908_v23 }
  0xac   : > { %vm2259_vm14 = vmpackc.low %vm407_vm12, %vm406_vm13 }
  0xad   : > { %2258 = vmatmul.mubr.msk.bf16.gmra.mxu0 %vm2257_vm8, %v2729_v26 }
  0xae   : > { %v389_v33 = vpop.permute.xlu1 %388  ;;  %v386_v34 = vpop.permute.xlu0 %385  ;;  %2423 = vmatpush3.bf16.msra.mxu1 %v2580_v29  ;;  %902 = vmatprep.mubr.bf16.mxu0 %v2728_v3 }
  0xaf   : > { %vm429_vm9 = vcmp.eq.s32.totalorder %v389_v33, %v2908_v23  ;;  %vm428_vm10 = vcmp.eq.s32.totalorder %v386_v34, %v2908_v23  ;;  %2424 = vmatprep.subr.bf16.mxu1 %v2581_v32 }
  0xb0   : > { %vm2281_vm11 = vmpackc.low %vm429_vm9, %vm428_vm10 }
  0xb1   : > { %2282 = vmatmul.mubr.msk.bf16.gmra.mxu1 %vm2281_vm11, %v2729_v26 }
  0xb2   : > { %v329_v36 = vpop.permute.xlu1 %328  ;;  %v326_v37 = vpop.permute.xlu0 %325  ;;  %2425 = vmatpush3.bf16.msra.mxu1 %v2581_v32  ;;  %1022 = vmatprep.mubr.bf16.mxu1 %v2728_v3 }
  0xb3   : > { %2426 = vmatprep.subr.bf16.mxu1 %v2582_v35  ;;  %vm409_vm2 = vcmp.eq.s32.totalorder %v329_v36, %v2908_v23  ;;  %vm408_vm3 = vcmp.eq.s32.totalorder %v326_v37, %v2908_v23 }
  0xb4   : > { %vm2261_vm4 = vmpackc.low %vm409_vm2, %vm408_vm3 }
  0xb5   : > { %2260 = vmatmul.mubr.msk.bf16.gmra.mxu0 %vm2259_vm14, %v2729_v26 }
  0xb6   : > { %v395_v39 = vpop.permute.xlu1 %394  ;;  %v392_v40 = vpop.permute.xlu0 %391  ;;  %2427 = vmatpush3.bf16.msra.mxu1 %v2582_v35  ;;  %912 = vmatprep.mubr.bf16.mxu0 %v2728_v3 }
  0xb7   : > { %vm431_vm15 = vcmp.eq.s32.totalorder %v395_v39, %v2908_v23  ;;  %vm430_vm0 = vcmp.eq.s32.totalorder %v392_v40, %v2908_v23  ;;  %2428 = vmatprep.subr.bf16.mxu1 %v2583_v38 }
  0xb8   : > { %vm2283_vm1 = vmpackc.low %vm431_vm15, %vm430_vm0 }
  0xb9   : > { %2284 = vmatmul.mubr.msk.bf16.gmra.mxu1 %vm2283_vm1, %v2729_v26 }
  0xba   : > { %v335_v42 = vpop.permute.xlu1 %334  ;;  %v332_v43 = vpop.permute.xlu0 %331  ;;  %2429 = vmatpush3.bf16.msra.mxu1 %v2583_v38  ;;  %1032 = vmatprep.mubr.bf16.mxu1 %v2728_v3 }
  0xbb   : > { %2430 = vmatprep.subr.bf16.mxu1 %v2584_v41  ;;  %vm411_vm8 = vcmp.eq.s32.totalorder %v335_v42, %v2908_v23  ;;  %vm410_vm9 = vcmp.eq.s32.totalorder %v332_v43, %v2908_v23 }
  0xbc   : > { %vm2263_vm10 = vmpackc.low %vm411_vm8, %vm410_vm9 }
  0xbd   : > { %2262 = vmatmul.mubr.msk.bf16.gmra.mxu0 %vm2261_vm4, %v2729_v26 }
  0xbe   : > { %v401_v45 = vpop.permute.xlu1 %400  ;;  %v398_v46 = vpop.permute.xlu0 %397  ;;  %2431 = vmatpush3.bf16.msra.mxu1 %v2584_v41  ;;  %922 = vmatprep.mubr.bf16.mxu0 %v2728_v3 }
  0xbf   : > { %vm433_vm5 = vcmp.eq.s32.totalorder %v401_v45, %v2908_v23  ;;  %vm432_vm6 = vcmp.eq.s32.totalorder %v398_v46, %v2908_v23  ;;  %2432 = vmatprep.subr.bf16.mxu1 %v2585_v44  ;;  %v2587_v45 = vld [vmem:[%s3271_s4 + $0x38] sm:$0xff]  }
  0xc0   : > { %vm2285_vm7 = vmpackc.low %vm433_vm5, %vm432_vm6 }
  0xc1   : > { %2286 = vmatmul.mubr.msk.bf16.gmra.mxu1 %vm2285_vm7, %v2729_v26 }
  0xc2   : > { %v341_v48 = vpop.permute.xlu1 %340  ;;  %v338_v49 = vpop.permute.xlu0 %337  ;;  %2433 = vmatpush3.bf16.msra.mxu1 %v2585_v44 }
  0xc3   : > { %2434 = vmatprep.subr.bf16.mxu1 %v2586_v47  ;;  %vm413_vm14 = vcmp.eq.s32.totalorder %v341_v48, %v2908_v23  ;;  %vm412_vm15 = vcmp.eq.s32.totalorder %v338_v49, %v2908_v23 }
  0xc4   : > { %vm2265_vm3 = vmpackc.low %vm413_vm14, %vm412_vm15 }
  0xc5   : > { %2264 = vmatmul.mubr.msk.bf16.gmra.mxu0 %vm2263_vm10, %v2729_v26 }
  0xc6   : > { %v551_v50 = vpop.permute.xlu1 %550  ;;  %v548_v51 = vpop.permute.xlu0 %547  ;;  %2435 = vmatpush3.bf16.msra.mxu1 %v2586_v47  ;;  %932 = vmatprep.mubr.bf16.mxu0 %v2728_v3 }
  0xc7   : > { %vm643_vm11 = vcmp.eq.s32.totalorder %v551_v50, %v2908_v23  ;;  %vm642_vm12 = vcmp.eq.s32.totalorder %v548_v51, %v2908_v23  ;;  %2468 = vmatprep.subr.bf16.mxu1 %v2587_v45  ;;  %v2588_v51 = vld [vmem:[%s3271_s4 + $0x30] sm:$0xff]  }
  0xc8   : > { %v2208_v53 = vsel %vm643_vm11, 1.0, %v2730_v52  ;;  %v2207_v54 = vsel %vm642_vm12, 1.0, %v2730_v52  ;;  %vm2295_vm13 = vmpackc.low %vm643_vm11, %vm642_vm12 }
  0xc9   : > { %v738_v55 = vpack.c.bf16 %v2208_v53, %v2207_v54  ;;  %2436 = vmatprep.mubr.msk.bf16.mxu1 %vm2295_vm13, %v2729_v26 }
  0xca   : > { %v557_v56 = vpop.permute.xlu1 %556  ;;  %v554_v57 = vpop.permute.xlu0 %553 }
  0xcb   : > { %vm645_vm0 = vcmp.eq.s32.totalorder %v557_v56, %v2908_v23  ;;  %vm644_vm1 = vcmp.eq.s32.totalorder %v554_v57, %v2908_v23  ;;  %1797 = vxpose.xlu1.c.b16.start [1/8] %v738_v55, 128  ;;  %v2589_v55 = vld [vmem:[%s3271_s4 + $0x28] sm:$0xff]  }
  0xcc   : > { %v2210_v58 = vsel %vm645_vm0, 1.0, %v2730_v52  ;;  %v2209_v59 = vsel %vm644_vm1, 1.0, %v2730_v52  ;;  %vm2297_vm2 = vmpackc.low %vm645_vm0, %vm644_vm1 }
  0xcd   : > { %v739_v60 = vpack.c.bf16 %v2210_v58, %v2209_v59  ;;  %2437 = vmatmul.mubr.msk.bf16.vlgmr.msra.gmra.mxu1 %vm2297_vm2, %v2729_v26  ;;  %2266 = vmatmul.mubr.msk.bf16.gmra.mxu0 %vm2265_vm3, %v2729_v26 }
  0xce   : > { %v347_v61 = vpop.permute.xlu1 %346  ;;  %v344_v62 = vpop.permute.xlu0 %343  ;;  %942 = vmatprep.mubr.bf16.mxu0 %v2728_v3  ;;  %2469 = vmatpush3.bf16.msra.mxu1 %v2587_v45 }
  0xcf   : > { %1798 = vxpose.xlu1.c.b16.cont [2/8] %v739_v60, 128  ;;  %vm415_vm4 = vcmp.eq.s32.totalorder %v347_v61, %v2908_v23  ;;  %vm414_vm5 = vcmp.eq.s32.totalorder %v344_v62, %v2908_v23  ;;  %2470 = vmatprep.subr.bf16.mxu1 %v2588_v51  ;;  %v2590_v60 = vld [vmem:[%s3271_s4 + $0x20] sm:$0xff]  }
  0xd0   : > { %vm2267_vm9 = vmpackc.low %vm415_vm4, %vm414_vm5 }
  0xd2   : > { %v563_v63 = vpop.permute.xlu1 %562  ;;  %v560_v0 = vpop.permute.xlu0 %559  ;;  %2471 = vmatpush3.bf16.msra.mxu1 %v2588_v51 }
  0xd3   : > { %vm647_vm6 = vcmp.eq.s32.totalorder %v563_v63, %v2908_v23  ;;  %vm646_vm7 = vcmp.eq.s32.totalorder %v560_v0, %v2908_v23  ;;  %2472 = vmatprep.subr.bf16.mxu1 %v2589_v55 }
  0xd4   : > { %v2212_v1 = vsel %vm647_vm6, 1.0, %v2730_v52  ;;  %v2211_v2 = vsel %vm646_vm7, 1.0, %v2730_v52  ;;  %vm2299_vm8 = vmpackc.low %vm647_vm6, %vm646_vm7 }
  0xd5   : > { %v740_v4 = vpack.c.bf16 %v2212_v1, %v2211_v2  ;;  %2440 = vmatprep.mubr.msk.bf16.mxu1 %vm2299_vm8, %v2729_v26  ;;  %2268 = vmatmul.mubr.msk.bf16.gmra.mxu0 %vm2267_vm9, %v2729_v26  ;;  %v2591_v2 = vld [vmem:[%s3271_s4 + $0x18] sm:$0xff]  }
  0xd6   : > { %v569_v5 = vpop.permute.xlu1 %568  ;;  %v566_v6 = vpop.permute.xlu0 %565  ;;  %952 = vmatprep.mubr.bf16.mxu0 %v2728_v3  ;;  %2473 = vmatpush3.bf16.msra.mxu1 %v2589_v55 }
  0xd7   : > { %vm649_vm10 = vcmp.eq.s32.totalorder %v569_v5, %v2908_v23  ;;  %vm648_vm11 = vcmp.eq.s32.totalorder %v566_v6, %v2908_v23  ;;  %1799 = vxpose.xlu1.c.b16.cont [3/8] %v740_v4, 128  ;;  %2474 = vmatprep.subr.bf16.mxu1 %v2590_v60  ;;  %v2592_v6 = vld [vmem:[%s3271_s4 + $0x10] sm:$0xff]  }
  0xd8   : > { %v2214_v7 = vsel %vm649_vm10, 1.0, %v2730_v52  ;;  %v2213_v8 = vsel %vm648_vm11, 1.0, %v2730_v52  ;;  %vm2301_vm12 = vmpackc.low %vm649_vm10, %vm648_vm11 }
  0xd9   : > { %v741_v9 = vpack.c.bf16 %v2214_v7, %v2213_v8  ;;  %2441 = vmatmul.mubr.msk.bf16.gmra.mxu1 %vm2301_vm12, %v2729_v26 }
  0xda   : > { %v353_v10 = vpop.permute.xlu1 %352  ;;  %v350_v11 = vpop.permute.xlu0 %349  ;;  %2475 = vmatpush3.bf16.msra.mxu1 %v2590_v60 }
  0xdb   : > { %vm417_vm13 = vcmp.eq.s32.totalorder %v353_v10, %v2908_v23  ;;  %vm416_vm14 = vcmp.eq.s32.totalorder %v350_v11, %v2908_v23  ;;  %1800 = vxpose.xlu1.c.b16.cont [4/8] %v741_v9, 128  ;;  %2476 = vmatprep.subr.bf16.mxu1 %v2591_v2 }
  0xdc   : > { %vm2269_vm15 = vmpackc.low %vm417_vm13, %vm416_vm14 }
  0xdd   : > { %2270 = vmatmul.mubr.msk.bf16.gmra.mxu0 %vm2269_vm15, %v2729_v26 }
  0xde   : > { %v575_v12 = vpop.permute.xlu1 %574  ;;  %v572_v13 = vpop.permute.xlu0 %571  ;;  %962 = vmatprep.mubr.bf16.mxu0 %v2728_v3  ;;  %2477 = vmatpush3.bf16.msra.mxu1 %v2591_v2 }
  0xdf   : > { %vm651_vm0 = vcmp.eq.s32.totalorder %v575_v12, %v2908_v23  ;;  %vm650_vm1 = vcmp.eq.s32.totalorder %v572_v13, %v2908_v23  ;;  %2478 = vmatprep.subr.bf16.mxu1 %v2592_v6  ;;  %v2593_v12 = vld [vmem:[%s3271_s4 + $0x8] sm:$0xff]  }
  0xe0   : > { %v2216_v14 = vsel %vm651_vm0, 1.0, %v2730_v52  ;;  %v2215_v15 = vsel %vm650_vm1, 1.0, %v2730_v52  ;;  %vm2303_vm2 = vmpackc.low %vm651_vm0, %vm650_vm1 }
  0xe1   : > { %v742_v16 = vpack.c.bf16 %v2216_v14, %v2215_v15  ;;  %2444 = vmatprep.mubr.msk.bf16.mxu1 %vm2303_vm2, %v2729_v26 }
  0xe2   : > { %v581_v17 = vpop.permute.xlu1 %580  ;;  %v578_v18 = vpop.permute.xlu0 %577  ;;  %2479 = vmatpush3.bf16.msra.mxu1 %v2592_v6 }
  0xe3   : > { %vm653_vm3 = vcmp.eq.s32.totalorder %v581_v17, %v2908_v23  ;;  %vm652_vm4 = vcmp.eq.s32.totalorder %v578_v18, %v2908_v23  ;;  %1801 = vxpose.xlu1.c.b16.cont [5/8] %v742_v16, 128  ;;  %2480 = vmatprep.subr.bf16.mxu1 %v2593_v12  ;;  %v2594_v18 = vld [vmem:[%s3271_s4] sm:$0xff]  }
  0xe4   : > { %v2218_v19 = vsel %vm653_vm3, 1.0, %v2730_v52  ;;  %v2217_v20 = vsel %vm652_vm4, 1.0, %v2730_v52  ;;  %vm2305_vm5 = vmpackc.low %vm653_vm3, %vm652_vm4 }
  0xe5   : > { %v743_v21 = vpack.c.bf16 %v2218_v19, %v2217_v20  ;;  %2445 = vmatmul.mubr.msk.bf16.gmra.mxu1 %vm2305_vm5, %v2729_v26 }
  0xe6   : > { %v359_v22 = vpop.permute.xlu1 %358  ;;  %v356_v24 = vpop.permute.xlu0 %355  ;;  %2481 = vmatpush3.bf16.msra.mxu1 %v2593_v12 }
  0xe7   : > { %vm419_vm6 = vcmp.eq.s32.totalorder %v359_v22, %v2908_v23  ;;  %vm418_vm7 = vcmp.eq.s32.totalorder %v356_v24, %v2908_v23  ;;  %1802 = vxpose.xlu1.c.b16.cont [6/8] %v743_v21, 128  ;;  %2482 = vmatprep.subr.bf16.mxu1 %v2594_v18 }
  0xe8   : > { %vm2271_vm8 = vmpackc.low %vm419_vm6, %vm418_vm7 }
  0xe9   : > { %2272 = vmatmul.mubr.msk.bf16.gmra.mxu0 %vm2271_vm8, %v2729_v26 }
  0xea   : > { %v587_v25 = vpop.permute.xlu1 %586  ;;  %v584_v27 = vpop.permute.xlu0 %583  ;;  %972 = vmatprep.mubr.bf16.mxu0 %v2728_v3  ;;  %2483 = vmatpush3.bf16.msra.mxu1 %v2594_v18 }
  0xeb   : > { %vm655_vm9 = vcmp.eq.s32.totalorder %v587_v25, %v2908_v23  ;;  %vm654_vm10 = vcmp.eq.s32.totalorder %v584_v27, %v2908_v23 }
  0xec   : > { %v2220_v28 = vsel %vm655_vm9, 1.0, %v2730_v52  ;;  %v2219_v29 = vsel %vm654_vm10, 1.0, %v2730_v52  ;;  %vm2307_vm11 = vmpackc.low %vm655_vm9, %vm654_vm10 }
  0xed   : > { %v744_v30 = vpack.c.bf16 %v2220_v28, %v2219_v29  ;;  %2448 = vmatprep.mubr.msk.bf16.mxu1 %vm2307_vm11, %v2729_v26 }
  0xee   : > { %v593_v31 = vpop.permute.xlu1 %592  ;;  %v590_v32 = vpop.permute.xlu0 %589 }
  0xef   : > { %vm657_vm12 = vcmp.eq.s32.totalorder %v593_v31, %v2908_v23  ;;  %vm656_vm13 = vcmp.eq.s32.totalorder %v590_v32, %v2908_v23  ;;  %1803 = vxpose.xlu1.c.b16.cont [7/8] %v744_v30, 128 }
  0xf0   : > { %v2222_v33 = vsel %vm657_vm12, 1.0, %v2730_v52  ;;  %v2221_v34 = vsel %vm656_vm13, 1.0, %v2730_v52  ;;  %vm2309_vm14 = vmpackc.low %vm657_vm12, %vm656_vm13 }
  0xf1   : > { %v745_v35 = vpack.c.bf16 %v2222_v33, %v2221_v34  ;;  %2449 = vmatmul.mubr.msk.bf16.gmra.mxu1 %vm2309_vm14, %v2729_v26 }
  0xf2   : > { %v365_v36 = vpop.permute.xlu1 %364  ;;  %v362_v37 = vpop.permute.xlu0 %361 }
  0xf3   : > { %vm421_vm15 = vcmp.eq.s32.totalorder %v365_v36, %v2908_v23  ;;  %vm420_vm0 = vcmp.eq.s32.totalorder %v362_v37, %v2908_v23  ;;  %1804 = vxpose.xlu1.c.b16.end [8/8] %v745_v35, 128 }
  0xf4   : > { %vm2273_vm1 = vmpackc.low %vm421_vm15, %vm420_vm0 }
  0xf5   : > { %2274 = vmatmul.mubr.msk.bf16.gmra.mxu0 %vm2273_vm1, %v2729_v26 }
  0xf6   : > { %v599_v38 = vpop.permute.xlu1 %598  ;;  %v596_v39 = vpop.permute.xlu0 %595  ;;  %982 = vmatprep.mubr.bf16.mxu0 %v2728_v3 }
  0xf7   : > { %vm659_vm2 = vcmp.eq.s32.totalorder %v599_v38, %v2908_v23  ;;  %vm658_vm3 = vcmp.eq.s32.totalorder %v596_v39, %v2908_v23 }
  0xf8   : > { %v2224_v40 = vsel %vm659_vm2, 1.0, %v2730_v52  ;;  %v2223_v41 = vsel %vm658_vm3, 1.0, %v2730_v52  ;;  %vm2311_vm4 = vmpackc.low %vm659_vm2, %vm658_vm3 }
  0xf9   : > { %v746_v42 = vpack.c.bf16 %v2224_v40, %v2223_v41  ;;  %2452 = vmatprep.mubr.msk.bf16.mxu1 %vm2311_vm4, %v2729_v26 }
  0xfa   : > { %v605_v43 = vpop.permute.xlu1 %604  ;;  %v602_v44 = vpop.permute.xlu0 %601 }
  0xfb   : > { %vm661_vm5 = vcmp.eq.s32.totalorder %v605_v43, %v2908_v23  ;;  %vm660_vm6 = vcmp.eq.s32.totalorder %v602_v44, %v2908_v23  ;;  %1813 = vxpose.xlu0.c.b16.start [1/8] %v746_v42, 128 }
  0xfc   : > { %v2226_v46 = vsel %vm661_vm5, 1.0, %v2730_v52  ;;  %v2225_v47 = vsel %vm660_vm6, 1.0, %v2730_v52  ;;  %vm2313_vm7 = vmpackc.low %vm661_vm5, %vm660_vm6 }
  0xfd   : > { %v747_v48 = vpack.c.bf16 %v2226_v46, %v2225_v47  ;;  %2453 = vmatmul.mubr.msk.bf16.gmra.mxu1 %vm2313_vm7, %v2729_v26 }
  0xfe   : > { %v371_v49 = vpop.permute.xlu1 %370  ;;  %v368_v50 = vpop.permute.xlu0 %367 }
  0xff   : > { %vm423_vm8 = vcmp.eq.s32.totalorder %v371_v49, %v2908_v23  ;;  %vm422_vm9 = vcmp.eq.s32.totalorder %v368_v50, %v2908_v23  ;;  %1814 = vxpose.xlu0.c.b16.cont [2/8] %v747_v48, 128 }
 0x100   : > { %vm2275_vm10 = vmpackc.low %vm423_vm8, %vm422_vm9 }
 0x101   : > { %2276 = vmatmul.mubr.msk.bf16.gmra.mxu0 %vm2275_vm10, %v2729_v26 }
 0x102   : > { %v611_v53 = vpop.permute.xlu1 %610  ;;  %v608_v54 = vpop.permute.xlu0 %607  ;;  %992 = vmatprep.mubr.bf16.mxu0 %v2728_v3 }
 0x103   : > { %vm663_vm11 = vcmp.eq.s32.totalorder %v611_v53, %v2908_v23  ;;  %vm662_vm12 = vcmp.eq.s32.totalorder %v608_v54, %v2908_v23 }
 0x104   : > { %v2228_v56 = vsel %vm663_vm11, 1.0, %v2730_v52  ;;  %v2227_v57 = vsel %vm662_vm12, 1.0, %v2730_v52  ;;  %vm2315_vm13 = vmpackc.low %vm663_vm11, %vm662_vm12 }
 0x105   : > { %v748_v58 = vpack.c.bf16 %v2228_v56, %v2227_v57  ;;  %2456 = vmatprep.mubr.msk.bf16.mxu1 %vm2315_vm13, %v2729_v26 }
 0x106   : > { %v617_v59 = vpop.permute.xlu1 %616  ;;  %v614_v3 = vpop.permute.xlu0 %613 }
 0x107   : > { %vm665_vm14 = vcmp.eq.s32.totalorder %v617_v59, %v2908_v23  ;;  %vm664_vm15 = vcmp.eq.s32.totalorder %v614_v3, %v2908_v23  ;;  %1815 = vxpose.xlu0.c.b16.cont [3/8] %v748_v58, 128 }
 0x108   : > { %v2230_v61 = vsel %vm665_vm14, 1.0, %v2730_v52  ;;  %v2229_v62 = vsel %vm664_vm15, 1.0, %v2730_v52  ;;  %vm2317_vm0 = vmpackc.low %vm665_vm14, %vm664_vm15 }
 0x109   : > { %v749_v63 = vpack.c.bf16 %v2230_v61, %v2229_v62  ;;  %2457 = vmatmul.mubr.msk.bf16.gmra.mxu1 %vm2317_vm0, %v2729_v26 }
 0x10a   : > { %v377_v0 = vpop.permute.xlu1 %376  ;;  %v374_v1 = vpop.permute.xlu0 %373 }
 0x10b   : > { %vm425_vm1 = vcmp.eq.s32.totalorder %v377_v0, %v2908_v23  ;;  %vm424_vm2 = vcmp.eq.s32.totalorder %v374_v1, %v2908_v23  ;;  %1816 = vxpose.xlu0.c.b16.cont [4/8] %v749_v63, 128 }
 0x10c   : > { %vm2277_vm3 = vmpackc.low %vm425_vm1, %vm424_vm2 }
 0x10d   : > { %2278 = vmatmul.mubr.msk.bf16.gmra.mxu0 %vm2277_vm3, %v2729_v26 }
 0x10e   : > { %v623_v4 = vpop.permute.xlu1 %622  ;;  %v620_v5 = vpop.permute.xlu0 %619 }
 0x10f   : > { %vm667_vm4 = vcmp.eq.s32.totalorder %v623_v4, %v2908_v23  ;;  %vm666_vm5 = vcmp.eq.s32.totalorder %v620_v5, %v2908_v23 }
 0x110   : > { %v2232_v7 = vsel %vm667_vm4, 1.0, %v2730_v52  ;;  %v2231_v8 = vsel %vm666_vm5, 1.0, %v2730_v52  ;;  %vm2319_vm6 = vmpackc.low %vm667_vm4, %vm666_vm5 }
 0x111   : > { %v750_v9 = vpack.c.bf16 %v2232_v7, %v2231_v8  ;;  %2460 = vmatprep.mubr.msk.bf16.mxu1 %vm2319_vm6, %v2729_v26 }
 0x112   : > { %v629_v10 = vpop.permute.xlu1 %628  ;;  %v626_v11 = vpop.permute.xlu0 %625 }
 0x113   : > { %vm669_vm7 = vcmp.eq.s32.totalorder %v629_v10, %v2908_v23  ;;  %vm668_vm8 = vcmp.eq.s32.totalorder %v626_v11, %v2908_v23  ;;  %1817 = vxpose.xlu0.c.b16.cont [5/8] %v750_v9, 128 }
 0x114   : > { %v2234_v13 = vsel %vm669_vm7, 1.0, %v2730_v52  ;;  %v2233_v14 = vsel %vm668_vm8, 1.0, %v2730_v52  ;;  %vm2321_vm9 = vmpackc.low %vm669_vm7, %vm668_vm8 }
 0x115   : > { %v751_v15 = vpack.c.bf16 %v2234_v13, %v2233_v14  ;;  %2461 = vmatmul.mubr.msk.bf16.gmra.mxu1 %vm2321_vm9, %v2729_v26 }
 0x116   : > { %v635_v16 = vpop.permute.xlu1 %634  ;;  %v632_v17 = vpop.permute.xlu0 %631 }
 0x117   : > { %vm671_vm10 = vcmp.eq.s32.totalorder %v635_v16, %v2908_v23  ;;  %vm670_vm11 = vcmp.eq.s32.totalorder %v632_v17, %v2908_v23  ;;  %1818 = vxpose.xlu0.c.b16.cont [6/8] %v751_v15, 128 }
 0x118   : > { %v2236_v19 = vsel %vm671_vm10, 1.0, %v2730_v52  ;;  %v2235_v20 = vsel %vm670_vm11, 1.0, %v2730_v52  ;;  %vm2323_vm12 = vmpackc.low %vm671_vm10, %vm670_vm11 }
 0x119   : > { %v752_v21 = vpack.c.bf16 %v2236_v19, %v2235_v20  ;;  %2464 = vmatprep.mubr.msk.bf16.mxu1 %vm2323_vm12, %v2729_v26 }
 0x11a   : > { %v641_v22 = vpop.permute.xlu1 %640  ;;  %v638_v24 = vpop.permute.xlu0 %637 }
 0x11b   : > { %vm673_vm13 = vcmp.eq.s32.totalorder %v641_v22, %v2908_v23  ;;  %vm672_vm14 = vcmp.eq.s32.totalorder %v638_v24, %v2908_v23  ;;  %1819 = vxpose.xlu0.c.b16.cont [7/8] %v752_v21, 128 }
 0x11c   : > { %v2238_v25 = vsel %vm673_vm13, 1.0, %v2730_v52  ;;  %v2237_v27 = vsel %vm672_vm14, 1.0, %v2730_v52  ;;  %vm2325_vm15 = vmpackc.low %vm673_vm13, %vm672_vm14 }
 0x11d   : > { %v753_v28 = vpack.c.bf16 %v2238_v25, %v2237_v27  ;;  %2465 = vmatmul.mubr.msk.bf16.gmra.mxu1 %vm2325_vm15, %v2729_v26 }
 0x11f   : > { %1820 = vxpose.xlu0.c.b16.end [8/8] %v753_v28, 128 }
 0x165   : > { %v884_v29 = vpop.f32.mrf.mxu0 }
 0x167   : > { %v3098_v30 = vpop.f32.mrf.mxu0 }
 0x169   : > { %v3100_v31 = vpop.f32.mrf.mxu1  ;;  %v888_v32 = vpop.f32.mrf.mxu0 }
 0x16b   : > { %v3102_v33 = vpop.f32.mrf.mxu1  ;;  %v3104_v34 = vpop.f32.mrf.mxu0 }
 0x16d   : > { %v3106_v23 = vpop.f32.mrf.mxu1  ;;  %v894_v35 = vpop.f32.mrf.mxu0 }
 0x16f   : > { %v3108_v36 = vpop.f32.mrf.mxu1  ;;  %v3110_v52 = vpop.f32.mrf.mxu0 }
 0x171   : > { %v3112_v37 = vpop.f32.mrf.mxu1  ;;  %v898_v26 = vpop.f32.mrf.mxu0 }
 0x173   : > { %v3114_v38 = vpop.f32.mrf.mxu1  ;;  %v3116_v39 = vpop.f32.mrf.mxu0 }
 0x175   : > { %v3118_v40 = vpop.f32.mrf.mxu1  ;;  %v904_v41 = vpop.f32.mrf.mxu0 }
 0x177   : > { %v3120_v42 = vpop.f32.mrf.mxu1  ;;  %v3122_v43 = vpop.f32.mrf.mxu0 }
 0x179   : > { %v3124_v44 = vpop.f32.mrf.mxu1  ;;  %v908_v45 = vpop.f32.mrf.mxu0 }
 0x17b   : > { %v3126_v46 = vpop.f32.mrf.mxu1  ;;  %v3128_v47 = vpop.f32.mrf.mxu0 }
 0x17d   : > { %v3130_v48 = vpop.f32.mrf.mxu1  ;;  %v914_v49 = vpop.f32.mrf.mxu0 }
 0x17f   : > { %v3132_v50 = vpop.f32.mrf.mxu1  ;;  %v3134_v51 = vpop.f32.mrf.mxu0 }
 0x181   : > { %v3136_v53 = vpop.f32.mrf.mxu1  ;;  %v918_v54 = vpop.f32.mrf.mxu0 }
 0x183   : > { %v3138_v55 = vpop.f32.mrf.mxu1  ;;  %v3140_v56 = vpop.f32.mrf.mxu0 }
 0x185   : > { %v924_v57 = vpop.f32.mrf.mxu0  ;;  %v3142_v58 = vpop.f32.mrf.mxu1 }
 0x187   : > { %v3144_v59 = vpop.f32.mrf.mxu0  ;;  %v3146_v60 = vpop.f32.mrf.mxu1 }
 0x189   : > { %v928_v3 = vpop.f32.mrf.mxu0 }
 0x18b   : > { %v3148_v61 = vpop.f32.mrf.mxu0 }
 0x18d   : > { %v2438_v62 = vpop.f32.mrf.mxu1  ;;  %v934_v63 = vpop.f32.mrf.mxu0 }
 0x18e   : > { %v1270_v7 = vmul.f32 %v2438_v62, %v894_v35 }
 0x18f   : > { %v1141_v0 = vpop.f32.mrf.mxu1  ;;  %v3150_v1 = vpop.f32.mrf.mxu0 }
 0x190   : > { %v1268_v4 = vmul.f32 %v1141_v0, %v884_v29  ;;  %v1302_v15 = vmul.f32 0.35355338, %v1270_v7 }
 0x191   : > { %v2439_v2 = vpop.f32.mrf.mxu1  ;;  %v938_v5 = vpop.f32.mrf.mxu0 }
 0x192   : > { %v1271_v6 = vmul.f32 %v2439_v2, %v898_v26  ;;  %v1300_v12 = vmul.f32 0.35355338, %v1268_v4 }
 0x193   : > { %v1144_v8 = vpop.f32.mrf.mxu1  ;;  %v3152_v9 = vpop.f32.mrf.mxu0 }
 0x194   : > { %v1269_v10 = vmul.f32 %v1144_v8, %v888_v32  ;;  %v1303_v11 = vmul.f32 0.35355338, %v1271_v6 }
 0x195   : > { %v944_v14 = vpop.f32.mrf.mxu0 }
 0x196   : > { %v1301_v13 = vmul.f32 0.35355338, %v1269_v10  ;;  %v1333_v18 = vpack.c.bf16 %v1303_v11, %v1302_v15 }
 0x197   : > { %v3154_v17 = vpop.f32.mrf.mxu0 }
 0x198   : > { %v1332_v16 = vpack.c.bf16 %v1301_v13, %v1300_v12 }
 0x199   : > { %v2442_v19 = vpop.f32.mrf.mxu1  ;;  %v948_v20 = vpop.f32.mrf.mxu0 }
 0x19a   : > { %2484 = vmatprep.mubr.bf16.mxu1 %v1332_v16  ;;  %v1274_v29 = vmul.f32 %v2442_v19, %v914_v49 }
 0x19b   : > { %v1157_v21 = vpop.f32.mrf.mxu1  ;;  %2485 = vmatmul.mubr.bf16.vlgmr.msra.gmra.mxu1 %v1333_v18  ;;  %v3156_v22 = vpop.f32.mrf.mxu0 }
 0x19c   : > { %v1272_v25 = vmul.f32 %v1157_v21, %v904_v41  ;;  %v1306_v4 = vmul.f32 0.35355338, %v1274_v29 }
 0x19d   : > { %v2443_v24 = vpop.f32.mrf.mxu1  ;;  %v954_v27 = vpop.f32.mrf.mxu0 }
 0x19e   : > { %v1275_v28 = vmul.f32 %v2443_v24, %v918_v54  ;;  %v1304_v0 = vmul.f32 0.35355338, %v1272_v25 }
 0x19f   : > { %v1160_v32 = vpop.f32.mrf.mxu1  ;;  %v3158_v35 = vpop.f32.mrf.mxu0 }
 0x1a0   : > { %v1273_v26 = vmul.f32 %v1160_v32, %v908_v45  ;;  %v1307_v62 = vmul.f32 0.35355338, %v1275_v28 }
 0x1a1   : > { %v958_v6 = vpop.f32.mrf.mxu0 }
 0x1a2   : > { %v1305_v2 = vmul.f32 0.35355338, %v1273_v26  ;;  %v1335_v8 = vpack.c.bf16 %v1307_v62, %v1306_v4 }
 0x1a3   : > { %v3160_v11 = vpop.f32.mrf.mxu0 }
 0x1a4   : > { %v1334_v7 = vpack.c.bf16 %v1305_v2, %v1304_v0 }
 0x1a5   : > { %v2446_v10 = vpop.f32.mrf.mxu1 }
 0x1a6   : > { %2488 = vmatprep.mubr.bf16.mxu1 %v1334_v7  ;;  %v1278_v15 = vmul.f32 %v2446_v10, %v934_v63 }
 0x1a7   : > { %v1173_v12 = vpop.f32.mrf.mxu1  ;;  %2489 = vmatmul.mubr.bf16.gmra.mxu1 %v1335_v8 }
 0x1a8   : > { %v1276_v49 = vmul.f32 %v1173_v12, %v924_v57  ;;  %v1310_v25 = vmul.f32 0.35355338, %v1278_v15 }
 0x1a9   : > { %v964_v41 = vpop.f32.mrf.mxu0  ;;  %v2447_v54 = vpop.f32.mrf.mxu1 }
 0x1aa   : > { %v1279_v13 = vmul.f32 %v2447_v54, %v938_v5  ;;  %v1308_v21 = vmul.f32 0.35355338, %v1276_v49 }
 0x1ab   : > { %v3162_v16 = vpop.f32.mrf.mxu0  ;;  %v1176_v45 = vpop.f32.mrf.mxu1 }
 0x1ac   : > { %v1277_v18 = vmul.f32 %v1176_v45, %v928_v3  ;;  %v1311_v19 = vmul.f32 0.35355338, %v1279_v13 }
 0x1ad   : > { %v968_v28 = vpop.f32.mrf.mxu0 }
 0x1ae   : > { %v1309_v24 = vmul.f32 0.35355338, %v1277_v18  ;;  %v1337_v32 = vpack.c.bf16 %v1311_v19, %v1310_v25 }
 0x1af   : > { %v3164_v62 = vpop.f32.mrf.mxu0 }
 0x1b0   : > { %v1336_v29 = vpack.c.bf16 %v1309_v24, %v1308_v21 }
 0x1b1   : > { %v2450_v26 = vpop.f32.mrf.mxu1 }
 0x1b2   : > { %2492 = vmatprep.mubr.bf16.mxu1 %v1336_v29  ;;  %v1282_v4 = vmul.f32 %v2450_v26, %v954_v27 }
 0x1b3   : > { %v1189_v0 = vpop.f32.mrf.mxu1  ;;  %2493 = vmatmul.mubr.bf16.gmra.mxu1 %v1337_v32 }
 0x1b4   : > { %v1280_v63 = vmul.f32 %v1189_v0, %v944_v14  ;;  %v1314_v49 = vmul.f32 0.35355338, %v1282_v4 }
 0x1b5   : > { %v974_v57 = vpop.f32.mrf.mxu0  ;;  %v2451_v5 = vpop.f32.mrf.mxu1 }
 0x1b6   : > { %v1283_v2 = vmul.f32 %v2451_v5, %v958_v6  ;;  %v1312_v12 = vmul.f32 0.35355338, %v1280_v63 }
 0x1b7   : > { %v3166_v7 = vpop.f32.mrf.mxu0  ;;  %v1192_v3 = vpop.f32.mrf.mxu1 }
 0x1b8   : > { %v1281_v8 = vmul.f32 %v1192_v3, %v948_v20  ;;  %v1315_v10 = vmul.f32 0.35355338, %v1283_v2 }
 0x1b9   : > { %v978_v13 = vpop.f32.mrf.mxu0 }
 0x1ba   : > { %v1313_v54 = vmul.f32 0.35355338, %v1281_v8  ;;  %v1339_v45 = vpack.c.bf16 %v1315_v10, %v1314_v49 }
 0x1bb   : > { %v3168_v19 = vpop.f32.mrf.mxu0 }
 0x1bc   : > { %v1338_v15 = vpack.c.bf16 %v1313_v54, %v1312_v12 }
 0x1bd   : > { %v2454_v18 = vpop.f32.mrf.mxu1 }
 0x1be   : > { %2496 = vmatprep.mubr.bf16.mxu1 %v1338_v15  ;;  %v1286_v25 = vmul.f32 %v2454_v18, %v974_v57 }
 0x1bf   : > { %v1205_v21 = vpop.f32.mrf.mxu1  ;;  %2497 = vmatmul.mubr.bf16.gmra.mxu1 %v1339_v45 }
 0x1c0   : > { %v1284_v27 = vmul.f32 %v1205_v21, %v964_v41  ;;  %v1318_v63 = vmul.f32 0.35355338, %v1286_v25 }
 0x1c1   : > { %v984_v14 = vpop.f32.mrf.mxu0  ;;  %v2455_v6 = vpop.f32.mrf.mxu1 }
 0x1c2   : > { %v1287_v24 = vmul.f32 %v2455_v6, %v978_v13  ;;  %v1316_v0 = vmul.f32 0.35355338, %v1284_v27 }
 0x1c3   : > { %v3170_v29 = vpop.f32.mrf.mxu0  ;;  %v1208_v20 = vpop.f32.mrf.mxu1 }
 0x1c4   : > { %v1285_v32 = vmul.f32 %v1208_v20, %v968_v28  ;;  %v1319_v26 = vmul.f32 0.35355338, %v1287_v24 }
 0x1c5   : > { %v988_v2 = vpop.f32.mrf.mxu0 }
 0x1c6   : > { %v1317_v5 = vmul.f32 0.35355338, %v1285_v32  ;;  %v1341_v3 = vpack.c.bf16 %v1319_v26, %v1318_v63 }
 0x1c7   : > { %v3172_v10 = vpop.f32.mrf.mxu0 }
 0x1c8   : > { %v1340_v4 = vpack.c.bf16 %v1317_v5, %v1316_v0 }
 0x1c9   : > { %v2458_v8 = vpop.f32.mrf.mxu1 }
 0x1ca   : > { %2500 = vmatprep.mubr.bf16.mxu1 %v1340_v4 }
 0x1cb   : > { %v1221_v12 = vpop.f32.mrf.mxu1  ;;  %2501 = vmatmul.mubr.bf16.gmra.mxu1 %v1341_v3 }
 0x1cc   : > { %v1288_v57 = vmul.f32 %v1221_v12, %v984_v14 }
 0x1cd   : > { %v994_v41 = vpop.f32.mrf.mxu0  ;;  %v2459_v54 = vpop.f32.mrf.mxu1 }
 0x1ce   : > { %v1290_v28 = vmul.f32 %v2458_v8, %v994_v41  ;;  %v1320_v18 = vmul.f32 0.35355338, %v1288_v57 }
 0x1cf   : > { %v3174_v49 = vpop.f32.mrf.mxu0  ;;  %v1224_v13 = vpop.f32.mrf.mxu1 }
 0x1d0   : > { %v1289_v15 = vmul.f32 %v1224_v13, %v988_v2  ;;  %v1322_v27 = vmul.f32 0.35355338, %v1290_v28 }
 0x1d1   : > { %v998_v45 = vpop.f32.mrf.mxu0 }
 0x1d2   : > { %v1321_v21 = vmul.f32 0.35355338, %v1289_v15  ;;  %v1291_v6 = vmul.f32 %v2459_v54, %v998_v45 }
 0x1d4   : > { %v1342_v24 = vpack.c.bf16 %v1321_v21, %v1320_v18  ;;  %v1323_v25 = vmul.f32 0.35355338, %v1291_v6 }
 0x1d5   : > { %v2462_v20 = vpop.f32.mrf.mxu1 }
 0x1d6   : > { %v1343_v32 = vpack.c.bf16 %v1323_v25, %v1322_v27  ;;  %2504 = vmatprep.mubr.bf16.mxu1 %v1342_v24  ;;  %v1294_v63 = vmul.f32 %v2462_v20, %v3112_v37 }
 0x1d7   : > { %v1237_v26 = vpop.f32.mrf.mxu1 }
 0x1d8   : > { %2505 = vmatmul.mubr.bf16.gmra.mxu1 %v1343_v32  ;;  %v1292_v14 = vmul.f32 %v1237_v26, %v3100_v31  ;;  %v1326_v54 = vmul.f32 0.35355338, %v1294_v63  ;;  %v1821_v32 = vpop.trf.xlu0 }
 0x1d9   : > { %v2463_v0 = vpop.f32.mrf.mxu1  ;;  %1861 = vmatprep.mubr.bf16.mxu0 %v1821_v32 }
 0x1da   : > { %v1295_v5 = vmul.f32 %v2463_v0, %v3118_v40  ;;  %v1324_v12 = vmul.f32 0.35355338, %v1292_v14 }
 0x1db   : > { %v1240_v2 = vpop.f32.mrf.mxu1 }
 0x1dc   : > { %v1293_v4 = vmul.f32 %v1240_v2, %v3106_v23  ;;  %v1327_v3 = vmul.f32 0.35355338, %v1295_v5 }
 0x1dd   : > { %v2466_v8 = vpop.f32.mrf.mxu1 }
 0x1de   : > { %v1325_v41 = vmul.f32 0.35355338, %v1293_v4  ;;  %v1345_v28 = vpack.c.bf16 %v1327_v3, %v1326_v54  ;;  %v1298_v40 = vmul.f32 %v2466_v8, %v3136_v53 }
 0x1df   : > { %v1253_v57 = vpop.f32.mrf.mxu1 }
 0x1e0   : > { %v1344_v13 = vpack.c.bf16 %v1325_v41, %v1324_v12  ;;  %v1296_v45 = vmul.f32 %v1253_v57, %v3124_v44  ;;  %v1330_v27 = vmul.f32 0.35355338, %v1298_v40 }
 0x1e1   : > { %v2467_v15 = vpop.f32.mrf.mxu1 }
 0x1e2   : > { %v1299_v31 = vmul.f32 %v2467_v15, %v3142_v58  ;;  %2508 = vmatprep.mubr.bf16.mxu1 %v1344_v13  ;;  %v1328_v21 = vmul.f32 0.35355338, %v1296_v45 }
 0x1e3   : > { %v1256_v37 = vpop.f32.mrf.mxu1  ;;  %2509 = vmatmul.mubr.bf16.gmra.mxu1 %v1345_v28 }
 0x1e4   : > { %v1297_v23 = vmul.f32 %v1256_v37, %v3130_v48  ;;  %v1331_v18 = vmul.f32 0.35355338, %v1299_v31 }
 0x1e6   : > { %v1329_v6 = vmul.f32 0.35355338, %v1297_v23  ;;  %v1347_v25 = vpack.c.bf16 %v1331_v18, %v1330_v27 }
 0x1e8   : > { %v1346_v24 = vpack.c.bf16 %v1329_v6, %v1328_v21 }
 0x1ea   : > { %2512 = vmatprep.mubr.bf16.mxu1 %v1346_v24 }
 0x1eb   : > { %2513 = vmatmul.mubr.bf16.gmra.mxu1 %v1347_v25 }
 0x25b   : > { %v3184_v20 = vpop.f32.mrf.mxu1 }
 0x25d   : > { %v3186_v44 = vpop.f32.mrf.mxu1 }
 0x25f   : > { %v3188_v58 = vpop.f32.mrf.mxu1 }
 0x261   : > { %v3190_v53 = vpop.f32.mrf.mxu1 }
 0x267   : > { %v2490_v26 = vpop.f32.mrf.mxu1 }
 0x269   : > { %v1462_v48 = vpop.f32.mrf.mxu1 }
 0x26b   : > { %v2491_v0 = vpop.f32.mrf.mxu1 }
 0x26c   : > { %v2342_v25 = vclamps-f32 %v2491_v0, 5.0 }
 0x26d   : > { %v1465_v14 = vpop.f32.mrf.mxu1 }
 0x273   : > { %v2494_v5 = vpop.f32.mrf.mxu1 }
 0x274   : > { %v2345_v31 = vclamps-f32 %v2494_v5, 5.0 }
 0x275   : > { %v1478_v63 = vpop.f32.mrf.mxu1 }
 0x276   : > { %v1657_v6 = vmul.f32 1.442695, %v2345_v31  ;;  %v2343_v27 = vclamps-f32 %v1478_v63, 5.0 }
 0x277   : > { %v2495_v2 = vpop.f32.mrf.mxu1 }
 0x278   : > { %v2346_v13 = vclamps-f32 %v2495_v2, 5.0  ;;  %v2341_v2 = vclamps-f32 %v2490_v26, 5.0  ;;  %v2337_v26 = vclamps-f32 %v3184_v20, 5.0 }
 0x279   : > { %v1481_v4 = vpop.f32.mrf.mxu1 }
 0x27a   : > { %v1659_v23 = vmul.f32 1.442695, %v2346_v13  ;;  %v2344_v18 = vclamps-f32 %v1481_v4, 5.0  ;;  %v1649_v4 = vmul.f32 1.442695, %v2341_v2 }
 0x27c   : > { %v1655_v32 = vmul.f32 1.442695, %v2344_v18 }
 0x27f   : > { %v2498_v3 = vpop.f32.mrf.mxu1 }
 0x280   : > { %v2349_v8 = vclamps-f32 %v2498_v3, 5.0  ;;  %v1653_v3 = vmul.f32 1.442695, %v2343_v27  ;;  %v2335_v27 = vclamps-f32 %v3186_v44, 5.0 }
 0x281   : > { %v1494_v12 = vpop.f32.mrf.mxu1 }
 0x282   : > { %v1665_v41 = vmul.f32 1.442695, %v2349_v8  ;;  %v2347_v54 = vclamps-f32 %v1494_v12, 5.0  ;;  %v1651_v8 = vmul.f32 1.442695, %v2342_v25  ;;  %v2340_v12 = vclamps-f32 %v1465_v14, 5.0 }
 0x283   : > { %v2499_v57 = vpop.f32.mrf.mxu1  ;;  %v1641_v25 = vmul.f32 1.442695, %v2337_v26 }
 0x284   : > { %v2350_v28 = vclamps-f32 %v2499_v57, 5.0  ;;  %v1661_v15 = vmul.f32 1.442695, %v2347_v54  ;;  %2595 = vpow2.f32 %v1665_v41  ;;  %v2339_v41 = vclamps-f32 %v1462_v48, 5.0 }
 0x285   : > { %v1497_v45 = vpop.f32.mrf.mxu1  ;;  %v2338_v57 = vclamps-f32 %v3188_v58, 5.0  ;;  %v1647_v0 = vmul.f32 1.442695, %v2340_v12  ;;  %v1637_v12 = vmul.f32 1.442695, %v2335_v27 }
 0x286   : > { %v1667_v40 = vmul.f32 1.442695, %v2350_v28  ;;  %v2348_v37 = vclamps-f32 %v1497_v45, 5.0 }
 0x288   : > { %2597 = vpow2.f32 %v1667_v40  ;;  %v1663_v21 = vmul.f32 1.442695, %v2348_v37  ;;  %v1643_v37 = vmul.f32 1.442695, %v2338_v57 }
 0x289   : > { %2599 = vpow2.f32 %v1661_v15  ;;  %v1645_v15 = vmul.f32 1.442695, %v2339_v41 }
 0x28a   : > { %2601 = vpow2.f32 %v1663_v21 }
 0x28b   : > { %v3192_v24 = vpop.f32.mrf.mxu1  ;;  %2603 = vpow2.f32 %v1659_v23  ;;  %v2336_v23 = vclamps-f32 %v3190_v53, 5.0 }
 0x28c   : > { %2605 = vpow2.f32 %v1657_v6 }
 0x28d   : > { %v3194_v5 = vpop.f32.mrf.mxu1  ;;  %2607 = vpow2.f32 %v1655_v32  ;;  %v1639_v53 = vmul.f32 1.442695, %v2336_v23 }
 0x28e   : > { %2609 = vpow2.f32 %v1653_v3 }
 0x28f   : > { %v3196_v54 = vpop.f32.mrf.mxu1  ;;  %2611 = vpow2.f32 %v1651_v8 }
 0x290   : > { %2613 = vpow2.f32 %v1649_v4 }
 0x291   : > { %v2596_v63 = vpop.eup %2595  ;;  %v3200_v45 = vpop.f32.mrf.mxu1  ;;  %2615 = vpow2.f32 %v1647_v0 }
 0x292   : > { %v1715_v31 = vmul.f32 %v2596_v63, %v3158_v35  ;;  %2617 = vpow2.f32 %v1645_v15 }
 0x293   : > { %2619 = vpow2.f32 %v1643_v37 }
 0x294   : > { %2621 = vpow2.f32 %v1641_v25 }
 0x295   : > { %v2598_v13 = vpop.eup %2597  ;;  %2623 = vpow2.f32 %v1639_v53 }
 0x296   : > { %v2600_v28 = vpop.eup %2599  ;;  %v1748_v14 = vpack.c.bf16 %v2598_v13, %v2596_v63  ;;  %v1716_v48 = vmul.f32 %v2598_v13, %v3160_v11  ;;  %2625 = vpow2.f32 %v1637_v12 }
 0x297   : > { %v2602_v40 = vpop.eup %2601  ;;  %v1713_v11 = vmul.f32 %v2600_v28, %v3154_v17 }
 0x298   : > { %v3205_v58 = vpop.f32.mrf.mxu1  ;;  %1829 = vmatprep.subr.bf16.mxu0 %v1748_v14  ;;  %v1747_v18 = vpack.c.bf16 %v1716_v48, %v1715_v31  ;;  %v1746_v20 = vpack.c.bf16 %v2602_v40, %v2600_v28  ;;  %v1714_v21 = vmul.f32 %v2602_v40, %v3156_v22  ;;  %v2604_v6 = vpop.eup %2603 }
 0x299   : > { %v2606_v32 = vpop.eup %2605  ;;  %v1712_v3 = vmul.f32 %v2604_v6, %v3152_v9 }
 0x29a   : > { %v3209_v35 = vpop.f32.mrf.mxu1  ;;  %1830 = vmatpush1.bf16.msra.mxu0 %v1747_v18  ;;  %v1745_v2 = vpack.c.bf16 %v1714_v21, %v1713_v11  ;;  %v2608_v8 = vpop.eup %2607  ;;  %v1744_v4 = vpack.c.bf16 %v2604_v6, %v2606_v32  ;;  %v1711_v44 = vmul.f32 %v2606_v32, %v3150_v1 }
 0x29b   : > { %1831 = vmatprep.subr.bf16.mxu0 %v1746_v20  ;;  %v2610_v41 = vpop.eup %2609  ;;  %v1710_v63 = vmul.f32 %v2608_v8, %v3148_v61 }
 0x29c   : > { %v3213_v22 = vpop.f32.mrf.mxu1  ;;  %v1743_v17 = vpack.c.bf16 %v1712_v3, %v1711_v44  ;;  %v2612_v57 = vpop.eup %2611  ;;  %v1742_v9 = vpack.c.bf16 %v2608_v8, %v2610_v41  ;;  %v1709_v26 = vmul.f32 %v2610_v41, %v3144_v59 }
 0x29d   : > { %v2614_v13 = vpop.eup %2613  ;;  %v1708_v1 = vmul.f32 %v2612_v57, %v3140_v56 }
 0x29e   : > { %1832 = vmatpush1.bf16.msra.mxu0 %v1745_v2  ;;  %v3217_v0 = vpop.f32.mrf.mxu1  ;;  %v1741_v15 = vpack.c.bf16 %v1710_v63, %v1709_v26  ;;  %v2616_v14 = vpop.eup %2615  ;;  %v1740_v48 = vpack.c.bf16 %v2612_v57, %v2614_v13  ;;  %v1707_v61 = vmul.f32 %v2614_v13, %v3134_v51 }
 0x29f   : > { %1833 = vmatprep.subr.bf16.mxu0 %v1744_v4  ;;  %v2618_v40 = vpop.eup %2617  ;;  %v1706_v18 = vmul.f32 %v2616_v14, %v3128_v47 }
 0x2a0   : > { %v1739_v23 = vpack.c.bf16 %v1708_v1, %v1707_v61  ;;  %v2620_v20 = vpop.eup %2619  ;;  %v1738_v59 = vpack.c.bf16 %v2616_v14, %v2618_v40  ;;  %v1705_v6 = vmul.f32 %v2618_v40, %v3122_v43  ;;  %v2358_v40 = vclamps-f32 %v3213_v22, 5.0 }
 0x2a1   : > { %v2622_v27 = vpop.eup %2621  ;;  %v1704_v51 = vmul.f32 %v2620_v20, %v3116_v39 }
 0x2a2   : > { %1834 = vmatpush1.bf16.msra.mxu0 %v1743_v17  ;;  %v2624_v25 = vpop.eup %2623  ;;  %v1737_v32 = vpack.c.bf16 %v1706_v18, %v1705_v6  ;;  %v1736_v2 = vpack.c.bf16 %v2620_v20, %v2622_v27  ;;  %v1703_v47 = vmul.f32 %v2622_v27, %v3110_v52  ;;  %v2356_v18 = vclamps-f32 %v3217_v0, 5.0 }
 0x2a3   : > { %v2510_v28 = vpop.f32.mrf.mxu1  ;;  %1835 = vmatprep.subr.bf16.mxu0 %v1742_v9  ;;  %v2626_v3 = vpop.eup %2625  ;;  %v1702_v43 = vmul.f32 %v2624_v25, %v3104_v34  ;;  %v2353_v27 = vclamps-f32 %v3192_v24, 5.0 }
 0x2a4   : > { %v1735_v17 = vpack.c.bf16 %v1704_v51, %v1703_v47  ;;  %v1734_v9 = vpack.c.bf16 %v2624_v25, %v2626_v3  ;;  %v1701_v39 = vmul.f32 %v2626_v3, %v3098_v30  ;;  %v2361_v13 = vclamps-f32 %v2510_v28, 5.0 }
 0x2a5   : > { %v1542_v31 = vpop.f32.mrf.mxu1  ;;  %v2357_v28 = vclamps-f32 %v3205_v58, 5.0  ;;  %v1679_v6 = vmul.f32 1.442695, %v2356_v18  ;;  %v1673_v24 = vmul.f32 1.442695, %v2353_v27 }
 0x2a6   : > { %1836 = vmatpush1.bf16.msra.mxu0 %v1741_v15  ;;  %v1733_v1 = vpack.c.bf16 %v1702_v43, %v1701_v39  ;;  %v1689_v34 = vmul.f32 1.442695, %v2361_v13  ;;  %v2359_v61 = vclamps-f32 %v1542_v31, 5.0  ;;  %v2354_v31 = vclamps-f32 %v3196_v54, 5.0 }
 0x2a7   : > { %v2511_v37 = vpop.f32.mrf.mxu1  ;;  %1837 = vmatprep.subr.bf16.mxu0 %v1740_v48  ;;  %v1681_v20 = vmul.f32 1.442695, %v2357_v28 }
 0x2a8   : > { %v2362_v44 = vclamps-f32 %v2511_v37, 5.0  ;;  %v1685_v37 = vmul.f32 1.442695, %v2359_v61  ;;  %v1675_v51 = vmul.f32 1.442695, %v2354_v31 }
 0x2a9   : > { %v1545_v21 = vpop.f32.mrf.mxu1 }
 0x2aa   : > { %1838 = vmatpush1.bf16.msra.mxu0 %v1739_v23  ;;  %v1691_v52 = vmul.f32 1.442695, %v2362_v44  ;;  %v2360_v14 = vclamps-f32 %v1545_v21, 5.0  ;;  %v1683_v23 = vmul.f32 1.442695, %v2358_v40  ;;  %v2355_v21 = vclamps-f32 %v3209_v35, 5.0 }
 0x2ab   : > { %v2514_v56 = vpop.f32.mrf.mxu1  ;;  %1839 = vmatprep.subr.bf16.mxu0 %v1738_v59  ;;  %v2352_v35 = vclamps-f32 %v3200_v45, 5.0 }
 0x2ac   : > { %v2365_v11 = vclamps-f32 %v2514_v56, 5.0  ;;  %v1687_v30 = vmul.f32 1.442695, %v2360_v14  ;;  %v1677_v56 = vmul.f32 1.442695, %v2355_v21  ;;  %v1805_v21 = vpop.trf.xlu1 }
 0x2ad   : > { %v1558_v53 = vpop.f32.mrf.mxu1 }
 0x2ae   : > { %v1697_v8 = vmul.f32 1.442695, %v2365_v11  ;;  %v2363_v12 = vclamps-f32 %v1558_v53, 5.0  ;;  %1840 = vmatpush1.bf16.msra.mxu0 %v1737_v32 }
 0x2af   : > { %v2515_v4 = vpop.f32.mrf.mxu1  ;;  %1841 = vmatprep.subr.bf16.mxu0 %v1736_v2 }
 0x2b0   : > { %v2366_v41 = vclamps-f32 %v2515_v4, 5.0  ;;  %v1693_v63 = vmul.f32 1.442695, %v2363_v12  ;;  %2627 = vpow2.f32 %v1697_v8  ;;  %v2351_v8 = vclamps-f32 %v3194_v5, 5.0 }
 0x2b1   : > { %v1561_v57 = vpop.f32.mrf.mxu1 }
 0x2b2   : > { %v1699_v26 = vmul.f32 1.442695, %v2366_v41  ;;  %v2364_v15 = vclamps-f32 %v1561_v57, 5.0  ;;  %1842 = vmatpush1.bf16.msra.mxu0 %v1735_v17  ;;  %v1669_v44 = vmul.f32 1.442695, %v2351_v8  ;;  %v1768_v8 = vld [vmem:[#allocation2 + $0x18] sm:$0xff] }
 0x2b3   : > { %1843 = vmatprep.subr.bf16.mxu0 %v1734_v9  ;;  %v1000_v9 = vpop.f32.mrf.mxu0 }
 0x2b4   : > { %2629 = vpow2.f32 %v1699_v26  ;;  %v1695_v48 = vmul.f32 1.442695, %v2364_v15 }
 0x2b5   : > { %2631 = vpow2.f32 %v1693_v63 }
 0x2b6   : > { %2633 = vpow2.f32 %v1695_v48  ;;  %1844 = vmatpush1.bf16.msra.mxu0 %v1733_v1 }
 0x2b7   : > { %2635 = vpow2.f32 %v1691_v52 }
 0x2b8   : > { %2637 = vpow2.f32 %v1689_v34 }
 0x2b9   : > { %2639 = vpow2.f32 %v1687_v30 }
 0x2ba   : > { %2641 = vpow2.f32 %v1685_v37 }
 0x2bb   : > { %2643 = vpow2.f32 %v1683_v23 }
 0x2bc   : > { %2645 = vpow2.f32 %v1681_v20 }
 0x2bd   : > { %v2628_v59 = vpop.eup %2627  ;;  %2647 = vpow2.f32 %v1679_v6 }
 0x2be   : > { %v1731_v11 = vmul.f32 %v2628_v59, %v3138_v55  ;;  %2649 = vpow2.f32 %v1677_v56 }
 0x2bf   : > { %2651 = vpow2.f32 %v1675_v51 }
 0x2c0   : > { %2653 = vpow2.f32 %v1673_v24 }
 0x2c1   : > { %v2630_v22 = vpop.eup %2629 }
 0x2c2   : > { %v2632_v58 = vpop.eup %2631  ;;  %v1764_v25 = vpack.c.bf16 %v2630_v22, %v2628_v59  ;;  %v1732_v0 = vmul.f32 %v2630_v22, %v3146_v60  ;;  %v1671_v60 = vmul.f32 1.442695, %v2352_v35  ;;  %v1822_v59 = vpop.trf.xlu0  ;;  %v1766_v35 = vld [vmem:[#allocation2] sm:$0xff] }
 0x2c3   : > { %v2634_v32 = vpop.eup %2633  ;;  %v1729_v55 = vmul.f32 %v2632_v58, %v3126_v46 }
 0x2c4   : > { %1845 = vmatprep.subr.bf16.mxu0 %v1764_v25  ;;  %v1763_v54 = vpack.c.bf16 %v1732_v0, %v1731_v11  ;;  %v1762_v53 = vpack.c.bf16 %v2634_v32, %v2632_v58  ;;  %v1730_v2 = vmul.f32 %v2634_v32, %v3132_v50  ;;  %v2636_v3 = vpop.eup %2635  ;;  %2655 = vpow2.f32 %v1671_v60  ;;  %v1765_v32 = vld [vmem:[#allocation2 + $0xb0] sm:$0xff] }
 0x2c5   : > { %v2638_v12 = vpop.eup %2637  ;;  %v1728_v45 = vmul.f32 %v2636_v3, %v3120_v42  ;;  %2657 = vpow2.f32 %v1669_v44  ;;  %v1769_v60 = vld [vmem:[#allocation2 + $0x50] sm:$0xff] }
 0x2c6   : > { %1846 = vmatpush2.bf16.msra.mxu0 %v1763_v54  ;;  %v1761_v47 = vpack.c.bf16 %v1730_v2, %v1729_v55  ;;  %v2640_v4 = vpop.eup %2639  ;;  %v1760_v43 = vpack.c.bf16 %v2636_v3, %v2638_v12  ;;  %v1727_v50 = vmul.f32 %v2638_v12, %v3114_v38  ;;  %v1823_v31 = vpop.trf.xlu0  ;;  %v1767_v2 = vld [vmem:[#allocation2 + $0xd8] sm:$0xff] }
 0x2c7   : > { %1847 = vmatprep.subr.bf16.mxu0 %v1762_v53  ;;  %v2642_v41 = vpop.eup %2641  ;;  %v1726_v46 = vmul.f32 %v2640_v4, %v3108_v36 }
 0x2c8   : > { %v1759_v5 = vpack.c.bf16 %v1728_v45, %v1727_v50  ;;  %v2644_v17 = vpop.eup %2643  ;;  %v1758_v63 = vpack.c.bf16 %v2640_v4, %v2642_v41  ;;  %v1725_v42 = vmul.f32 %v2642_v41, %v3102_v33  ;;  %v1770_v4 = vld [vmem:[#allocation2 + $0x68] sm:$0xff]  ;;  %v1771_v50 = vld [vmem:[#allocation2 + $0x30] sm:$0xff] }
 0x2c9   : > { %v2646_v57 = vpop.eup %2645  ;;  %v1724_v13 = vmul.f32 %v2644_v17, %v1000_v9 }
 0x2ca   : > { %1848 = vmatpush2.bf16.msra.mxu0 %v1761_v47  ;;  %v1757_v39 = vpack.c.bf16 %v1726_v46, %v1725_v42  ;;  %v2648_v26 = vpop.eup %2647  ;;  %v1756_v15 = vpack.c.bf16 %v2644_v17, %v2646_v57  ;;  %v1723_v38 = vmul.f32 %v2646_v57, %v3174_v49  ;;  %v1824_v6 = vpop.trf.xlu0  ;;  %v1772_v46 = vld [vmem:[#allocation2 + $0x48] sm:$0xff]  ;;  %v1773_v57 = vld [vmem:[#allocation2 + $0x80] sm:$0xff] }
 0x2cb   : > { %1849 = vmatprep.subr.bf16.mxu0 %v1760_v43  ;;  %v2650_v1 = vpop.eup %2649  ;;  %v1722_v36 = vmul.f32 %v2648_v26, %v3172_v10 }
 0x2cc   : > { %v1755_v52 = vpack.c.bf16 %v1724_v13, %v1723_v38  ;;  %v2652_v14 = vpop.eup %2651  ;;  %v1754_v48 = vpack.c.bf16 %v2648_v26, %v2650_v1  ;;  %v1721_v34 = vmul.f32 %v2650_v1, %v3170_v29 }
 0x2cd   : > { %v2654_v33 = vpop.eup %2653  ;;  %v1720_v40 = vmul.f32 %v2652_v14, %v3168_v19  ;;  %v1806_v19 = vpop.trf.xlu1 }
 0x2ce   : > { %1850 = vmatpush2.bf16.msra.mxu0 %v1759_v5  ;;  %v1753_v61 = vpack.c.bf16 %v1722_v36, %v1721_v34  ;;  %v1752_v28 = vpack.c.bf16 %v2652_v14, %v2654_v33  ;;  %v1719_v49 = vmul.f32 %v2654_v33, %v3166_v7  ;;  %v1825_v22 = vpop.trf.xlu0 }
 0x2cf   : > { %1851 = vmatprep.subr.bf16.mxu0 %v1758_v63 }
 0x2d0   : > { %v1751_v23 = vpack.c.bf16 %v1720_v40, %v1719_v49 }
 0x2d1   : > { %v2656_v30 = vpop.eup %2655  ;;  %v1807_v7 = vpop.trf.xlu1 }
 0x2d2   : > { %1852 = vmatpush2.bf16.msra.mxu0 %v1757_v39  ;;  %v2658_v37 = vpop.eup %2657  ;;  %v1718_v10 = vmul.f32 %v2656_v30, %v3164_v62  ;;  %v1826_v27 = vpop.trf.xlu0  ;;  %v1774_v39 = vld [vmem:[#allocation2 + $0x88] sm:$0xff] }
 0x2d3   : > { %1853 = vmatprep.subr.bf16.mxu0 %v1756_v15  ;;  %v1750_v18 = vpack.c.bf16 %v2656_v30, %v2658_v37  ;;  %v1717_v20 = vmul.f32 %v2658_v37, %v3162_v16  ;;  %v1775_v15 = vld [vmem:[#allocation2 + $0xe8] sm:$0xff] }
 0x2d5   : > { %v1749_v29 = vpack.c.bf16 %v1718_v10, %v1717_v20  ;;  %v1808_v62 = vpop.trf.xlu1  ;;  %v1781_v20 = vld [vmem:[#allocation2 + $0x38] sm:$0xff] }
 0x2d6   : > { %1854 = vmatpush2.bf16.msra.mxu0 %v1755_v52  ;;  %v1827_v56 = vpop.trf.xlu0  ;;  %v1776_v52 = vld [vmem:[#allocation2 + $0xb8] sm:$0xff] }
 0x2d7   : > { %1855 = vmatprep.subr.bf16.mxu0 %v1754_v48  ;;  %v1777_v48 = vld [vmem:[#allocation2 + $0x60] sm:$0xff] }
 0x2d9   : > { %v1809_v16 = vpop.trf.xlu1 }
 0x2da   : > { %1856 = vmatpush2.bf16.msra.mxu0 %v1753_v61  ;;  %v1828_v11 = vpop.trf.xlu0  ;;  %v1778_v61 = vld [vmem:[#allocation2 + $0xf0] sm:$0xff] }
 0x2db   : > { %1857 = vmatprep.subr.bf16.mxu0 %v1752_v28  ;;  %v1779_v28 = vld [vmem:[#allocation2 + $0x8] sm:$0xff] }
 0x2dd   : > { %v1810_v58 = vpop.trf.xlu1 }
 0x2de   : > { %1858 = vmatpush2.bf16.msra.mxu0 %v1751_v23  ;;  %v1780_v23 = vld [vmem:[#allocation2 + $0x78] sm:$0xff] }
 0x2df   : > { %1859 = vmatprep.subr.bf16.mxu0 %v1750_v18 }
 0x2e1   : > { %v1811_v25 = vpop.trf.xlu1 }
 0x2e2   : > { %1860 = vmatpush2.bf16.msra.mxu0 %v1749_v29 }
 0x2e5   : > { %1862 = vmatmul.mubr.bf16.vlgmr.msra.gmra.mxu0 %v1805_v21  ;;  %v1812_v0 = vpop.trf.xlu1 }
 0x2e6   : > { %1871 = vmatprep.mubr.bf16.mxu0 %v1822_v59  ;;  %v1782_v59 = vld [vmem:[#allocation2 + $0x58] sm:$0xff] }
 0x2ed   : > { %1872 = vmatmul.mubr.bf16.gmra.mxu0 %v1806_v19 }
 0x2ee   : > { %1881 = vmatprep.mubr.bf16.mxu0 %v1823_v31 }
 0x2f5   : > { %1882 = vmatmul.mubr.bf16.gmra.mxu0 %v1807_v7  ;;  %v1783_v7 = vld [vmem:[#allocation2 + $0x40] sm:$0xff] }
 0x2f6   : > { %1891 = vmatprep.mubr.bf16.mxu0 %v1824_v6 }
 0x2fd   : > { %1892 = vmatmul.mubr.bf16.gmra.mxu0 %v1808_v62 }
 0x2fe   : > { %1901 = vmatprep.mubr.bf16.mxu0 %v1825_v22  ;;  %v1784_v22 = vld [vmem:[#allocation2 + $0xc8] sm:$0xff] }
 0x305   : > { %1902 = vmatmul.mubr.bf16.gmra.mxu0 %v1809_v16 }
 0x306   : > { %1911 = vmatprep.mubr.bf16.mxu0 %v1826_v27 }
 0x30d   : > { %1912 = vmatmul.mubr.bf16.gmra.mxu0 %v1810_v58  ;;  %v1785_v58 = vld [vmem:[#allocation2 + $0xe0] sm:$0xff] }
 0x30e   : > { %1921 = vmatprep.mubr.bf16.mxu0 %v1827_v56 }
 0x315   : > { %1922 = vmatmul.mubr.bf16.gmra.mxu0 %v1811_v25 }
 0x316   : > { %1931 = vmatprep.mubr.bf16.mxu0 %v1828_v11  ;;  %v1786_v11 = vld [vmem:[#allocation2 + $0x90] sm:$0xff] }
 0x31d   : > { %1932 = vmatmul.mubr.bf16.gmra.mxu0 %v1812_v0 }
 0x3a5   : > { %v1863_v51 = vpop.f32.mrf.mxu0 }
 0x3a6   : > { %v1942_v54 = vadd.f32 %v1863_v51, %v1765_v32  ;;  %v1787_v51 = vld [vmem:[#allocation2 + $0x70] sm:$0xff] }
 0x3a7   : > { %v1865_v53 = vpop.f32.mrf.mxu0 }
 0x3a8   : > { %1974 = vst [vmem:[#allocation2 + $0xb0] sm:$0xff] %v1942_v54  ;;  %v1943_v3 = vadd.f32 %v1865_v53, %v1766_v35  ;;  %v1788_v53 = vld [vmem:[#allocation2 + $0xc0] sm:$0xff] }
 0x3a9   : > { %v1867_v24 = vpop.f32.mrf.mxu0 }
 0x3aa   : > { %1975 = vst [vmem:[#allocation2] sm:$0xff] %v1943_v3  ;;  %v1944_v55 = vadd.f32 %v1867_v24, %v1767_v2  ;;  %v1789_v24 = vld [vmem:[#allocation2 + $0xa8] sm:$0xff] }
 0x3ab   : > { %v1869_v12 = vpop.f32.mrf.mxu0 }
 0x3ac   : > { %1976 = vst [vmem:[#allocation2 + $0xd8] sm:$0xff] %v1944_v55  ;;  %v1945_v47 = vadd.f32 %v1869_v12, %v1768_v8  ;;  %v1790_v12 = vld [vmem:[#allocation2 + $0xd0] sm:$0xff] }
 0x3ad   : > { %v1873_v45 = vpop.f32.mrf.mxu0 }
 0x3ae   : > { %1977 = vst [vmem:[#allocation2 + $0x18] sm:$0xff] %v1945_v47  ;;  %v1946_v43 = vadd.f32 %v1873_v45, %v1769_v60  ;;  %v1791_v45 = vld [vmem:[#allocation2 + $0x10] sm:$0xff] }
 0x3af   : > { %v1875_v44 = vpop.f32.mrf.mxu0 }
 0x3b0   : > { %1978 = vst [vmem:[#allocation2 + $0x50] sm:$0xff] %v1946_v43  ;;  %v1947_v41 = vadd.f32 %v1875_v44, %v1770_v4  ;;  %v1792_v44 = vld [vmem:[#allocation2 + $0x28] sm:$0xff] }
 0x3b1   : > { %v1877_v5 = vpop.f32.mrf.mxu0 }
 0x3b2   : > { %1979 = vst [vmem:[#allocation2 + $0x68] sm:$0xff] %v1947_v41  ;;  %v1948_v17 = vadd.f32 %v1877_v5, %v1771_v50  ;;  %v1793_v5 = vld [vmem:[#allocation2 + $0xa0] sm:$0xff] }
 0x3b3   : > { %v1879_v63 = vpop.f32.mrf.mxu0 }
 0x3b4   : > { %1980 = vst [vmem:[#allocation2 + $0x30] sm:$0xff] %v1948_v17  ;;  %v1949_v42 = vadd.f32 %v1879_v63, %v1772_v46  ;;  %v1794_v63 = vld [vmem:[#allocation2 + $0xf8] sm:$0xff] }
 0x3b5   : > { %v1883_v9 = vpop.f32.mrf.mxu0 }
 0x3b6   : > { %1981 = vst [vmem:[#allocation2 + $0x48] sm:$0xff] %v1949_v42  ;;  %v1950_v13 = vadd.f32 %v1883_v9, %v1773_v57  ;;  %v1795_v9 = vld [vmem:[#allocation2 + $0x20] sm:$0xff] }
 0x3b7   : > { %v1885_v26 = vpop.f32.mrf.mxu0 }
 0x3b8   : > { %1982 = vst [vmem:[#allocation2 + $0x80] sm:$0xff] %v1950_v13  ;;  %v1951_v38 = vadd.f32 %v1885_v26, %v1774_v39  ;;  %v1796_v26 = vld [vmem:[#allocation2 + $0x98] sm:$0xff] }
 0x3b9   : > { %v1887_v1 = vpop.f32.mrf.mxu0 }
 0x3ba   : > { %1983 = vst [vmem:[#allocation2 + $0x88] sm:$0xff] %v1951_v38  ;;  %v1952_v36 = vadd.f32 %v1887_v1, %v1775_v15 }
 0x3bb   : > { %v1889_v14 = vpop.f32.mrf.mxu0 }
 0x3bc   : > { %1984 = vst [vmem:[#allocation2 + $0xe8] sm:$0xff] %v1952_v36  ;;  %v1953_v34 = vadd.f32 %v1889_v14, %v1776_v52 }
 0x3bd   : > { %v1893_v33 = vpop.f32.mrf.mxu0 }
 0x3be   : > { %1985 = vst [vmem:[#allocation2 + $0xb8] sm:$0xff] %v1953_v34  ;;  %v1954_v40 = vadd.f32 %v1893_v33, %v1777_v48 }
 0x3bf   : > { %v1895_v30 = vpop.f32.mrf.mxu0 }
 0x3c0   : > { %1986 = vst [vmem:[#allocation2 + $0x60] sm:$0xff] %v1954_v40  ;;  %v1955_v49 = vadd.f32 %v1895_v30, %v1778_v61 }
 0x3c1   : > { %v1897_v37 = vpop.f32.mrf.mxu0 }
 0x3c2   : > { %1987 = vst [vmem:[#allocation2 + $0xf0] sm:$0xff] %v1955_v49  ;;  %v1956_v10 = vadd.f32 %v1897_v37, %v1779_v28 }
 0x3c3   : > { %v1899_v18 = vpop.f32.mrf.mxu0 }
 0x3c4   : > { %1988 = vst [vmem:[#allocation2 + $0x8] sm:$0xff] %v1956_v10  ;;  %v1957_v29 = vadd.f32 %v1899_v18, %v1780_v23 }
 0x3c5   : > { %v1903_v21 = vpop.f32.mrf.mxu0 }
 0x3c6   : > { %1989 = vst [vmem:[#allocation2 + $0x78] sm:$0xff] %v1957_v29  ;;  %v1958_v19 = vadd.f32 %v1903_v21, %v1781_v20 }
 0x3c7   : > { %v1905_v31 = vpop.f32.mrf.mxu0 }
 0x3c8   : > { %1990 = vst [vmem:[#allocation2 + $0x38] sm:$0xff] %v1958_v19  ;;  %v1959_v6 = vadd.f32 %v1905_v31, %v1782_v59 }
 0x3c9   : > { %v1907_v62 = vpop.f32.mrf.mxu0 }
 0x3ca   : > { %1991 = vst [vmem:[#allocation2 + $0x58] sm:$0xff] %v1959_v6  ;;  %v1960_v16 = vadd.f32 %v1907_v62, %v1783_v7 }
 0x3cb   : > { %v1909_v27 = vpop.f32.mrf.mxu0 }
 0x3cc   : > { %1992 = vst [vmem:[#allocation2 + $0x40] sm:$0xff] %v1960_v16  ;;  %v1961_v56 = vadd.f32 %v1909_v27, %v1784_v22 }
 0x3cd   : > { %v1913_v25 = vpop.f32.mrf.mxu0 }
 0x3ce   : > { %1993 = vst [vmem:[#allocation2 + $0xc8] sm:$0xff] %v1961_v56  ;;  %v1962_v0 = vadd.f32 %v1913_v25, %v1785_v58 }
 0x3cf   : > { %v1915_v32 = vpop.f32.mrf.mxu0 }
 0x3d0   : > { %1994 = vst [vmem:[#allocation2 + $0xe0] sm:$0xff] %v1962_v0  ;;  %v1963_v35 = vadd.f32 %v1915_v32, %v1786_v11 }
 0x3d1   : > { %v1917_v54 = vpop.f32.mrf.mxu0 }
 0x3d2   : > { %1995 = vst [vmem:[#allocation2 + $0x90] sm:$0xff] %v1963_v35  ;;  %v1964_v2 = vadd.f32 %v1917_v54, %v1787_v51 }
 0x3d3   : > { %v1919_v3 = vpop.f32.mrf.mxu0 }
 0x3d4   : > { %1996 = vst [vmem:[#allocation2 + $0x70] sm:$0xff] %v1964_v2  ;;  %v1965_v8 = vadd.f32 %v1919_v3, %v1788_v53 }
 0x3d5   : > { %v1923_v55 = vpop.f32.mrf.mxu0 }
 0x3d6   : > { %1997 = vst [vmem:[#allocation2 + $0xc0] sm:$0xff] %v1965_v8  ;;  %v1966_v60 = vadd.f32 %v1923_v55, %v1789_v24 }
 0x3d7   : > { %v1925_v47 = vpop.f32.mrf.mxu0 }
 0x3d8   : > { %1998 = vst [vmem:[#allocation2 + $0xa8] sm:$0xff] %v1966_v60  ;;  %v1967_v4 = vadd.f32 %v1925_v47, %v1790_v12 }
 0x3d9   : > { %v1927_v43 = vpop.f32.mrf.mxu0 }
 0x3da   : > { %1999 = vst [vmem:[#allocation2 + $0xd0] sm:$0xff] %v1967_v4  ;;  %v1968_v50 = vadd.f32 %v1927_v43, %v1791_v45 }
 0x3db   : > { %v1929_v41 = vpop.f32.mrf.mxu0 }
 0x3dc   : > { %2000 = vst [vmem:[#allocation2 + $0x10] sm:$0xff] %v1968_v50  ;;  %v1969_v46 = vadd.f32 %v1929_v41, %v1792_v44 }
 0x3dd   : > { %v1933_v17 = vpop.f32.mrf.mxu0 }
 0x3de   : > { %2001 = vst [vmem:[#allocation2 + $0x28] sm:$0xff] %v1969_v46  ;;  %v1970_v57 = vadd.f32 %v1933_v17, %v1793_v5 }
 0x3df   : > { %v1935_v42 = vpop.f32.mrf.mxu0 }
 0x3e0   : > { %2002 = vst [vmem:[#allocation2 + $0xa0] sm:$0xff] %v1970_v57  ;;  %v1971_v39 = vadd.f32 %v1935_v42, %v1794_v63 }
 0x3e1   : > { %v1937_v13 = vpop.f32.mrf.mxu0 }
 0x3e2   : > { %2003 = vst [vmem:[#allocation2 + $0xf8] sm:$0xff] %v1971_v39  ;;  %v1972_v15 = vadd.f32 %v1937_v13, %v1795_v9  ;;  %2009 = sbr.rel (%p2367_p5) target bundleno = 1034 (0x40a), region = 48 }
 0x3e3   : > { %v1939_v38 = vpop.f32.mrf.mxu0 }
 0x3e4   : > { %2004 = vst [vmem:[#allocation2 + $0x20] sm:$0xff] %v1972_v15  ;;  %v1973_v1 = vadd.f32 %v1939_v38, %v1796_v26 }
 0x3e6   : > { %2005 = vst [vmem:[#allocation2 + $0x98] sm:$0xff] %v1973_v1 }
 0x3e7   : > { %v2026_v52 = vld [vmem:[#allocation2] sm:$0xff]  ;;  %v2027_v14 = vld [vmem:[#allocation2 + $0x18] sm:$0xff]  ;;  %v2028_v48 = vld [vmem:[#allocation2 + $0x68] sm:$0xff] }
 0x3e8   : > { %v2042_v36 = vadd.f32 1e-06, %v2026_v52  ;;  %v2043_v34 = vadd.f32 1e-06, %v2027_v14  ;;  %v2044_v33 = vadd.f32 1e-06, %v2028_v48 }
 0x3e9   : > { %v2029_v61 = vld [vmem:[#allocation2 + $0x48] sm:$0xff]  ;;  %v2031_v49 = vld [vmem:[#allocation2 + $0xb8] sm:$0xff]  ;;  %v2032_v37 = vld [vmem:[#allocation2 + $0xf0] sm:$0xff] }
 0x3ea   : > { %2659 = vrcp.f32 %v2042_v36  ;;  %v2045_v40 = vadd.f32 1e-06, %v2029_v61  ;;  %v2030_v30 = vld [vmem:[#allocation2 + $0x88] sm:$0xff]  ;;  %v2047_v23 = vadd.f32 1e-06, %v2031_v49  ;;  %v2033_v18 = vld [vmem:[#allocation2 + $0x78] sm:$0xff] }
 0x3eb   : > { %2661 = vrcp.f32 %v2043_v34  ;;  %v2046_v28 = vadd.f32 1e-06, %v2030_v30  ;;  %v2048_v10 = vadd.f32 1e-06, %v2032_v37  ;;  %v2049_v20 = vadd.f32 1e-06, %v2033_v18 }
 0x3ec   : > { %2663 = vrcp.f32 %v2044_v33  ;;  %v2034_v29 = vld [vmem:[#allocation2 + $0x58] sm:$0xff]  ;;  %v2035_v59 = vld [vmem:[#allocation2 + $0xc8] sm:$0xff]  ;;  %v2036_v19 = vld [vmem:[#allocation2 + $0x90] sm:$0xff] }
 0x3ed   : > { %2665 = vrcp.f32 %v2045_v40  ;;  %v2050_v21 = vadd.f32 1e-06, %v2034_v29  ;;  %v2051_v31 = vadd.f32 1e-06, %v2035_v59  ;;  %v2037_v7 = vld [vmem:[#allocation2 + $0xc0] sm:$0xff]  ;;  %v2038_v62 = vld [vmem:[#allocation2 + $0xd0] sm:$0xff] }
 0x3ee   : > { %2667 = vrcp.f32 %v2046_v28  ;;  %v2052_v6 = vadd.f32 1e-06, %v2036_v19  ;;  %v2053_v22 = vadd.f32 1e-06, %v2037_v7  ;;  %v2039_v16 = vld [vmem:[#allocation2 + $0x28] sm:$0xff]  ;;  %v2040_v27 = vld [vmem:[#allocation2 + $0xf8] sm:$0xff] }
 0x3ef   : > { %2669 = vrcp.f32 %v2047_v23  ;;  %v2054_v58 = vadd.f32 1e-06, %v2038_v62  ;;  %v2041_v56 = vld [vmem:[#allocation2 + $0x98] sm:$0xff]  ;;  %v2055_v25 = vadd.f32 1e-06, %v2039_v16  ;;  %v2010_v0 = vld [vmem:[#allocation2 + $0xb0] sm:$0xff] }
 0x3f0   : > { %2671 = vrcp.f32 %v2048_v10  ;;  %v2056_v11 = vadd.f32 1e-06, %v2040_v27  ;;  %v2057_v32 = vadd.f32 1e-06, %v2041_v56  ;;  %v2011_v51 = vld [vmem:[#allocation2 + $0xd8] sm:$0xff]  ;;  %v2012_v54 = vld [vmem:[#allocation2 + $0x50] sm:$0xff] }
 0x3f1   : > { %2673 = vrcp.f32 %v2049_v20  ;;  %v2013_v3 = vld [vmem:[#allocation2 + $0x30] sm:$0xff]  ;;  %v2014_v55 = vld [vmem:[#allocation2 + $0x80] sm:$0xff]  ;;  %v2015_v47 = vld [vmem:[#allocation2 + $0xe8] sm:$0xff] }
 0x3f2   : > { %2675 = vrcp.f32 %v2050_v21  ;;  %v2016_v43 = vld [vmem:[#allocation2 + $0x60] sm:$0xff]  ;;  %v2017_v41 = vld [vmem:[#allocation2 + $0x8] sm:$0xff]  ;;  %v2018_v17 = vld [vmem:[#allocation2 + $0x38] sm:$0xff] }
 0x3f3   : > { %2677 = vrcp.f32 %v2051_v31  ;;  %v2019_v42 = vld [vmem:[#allocation2 + $0x40] sm:$0xff]  ;;  %v2021_v38 = vld [vmem:[#allocation2 + $0x70] sm:$0xff]  ;;  %v2022_v36 = vld [vmem:[#allocation2 + $0xa8] sm:$0xff] }
 0x3f4   : > { %2679 = vrcp.f32 %v2052_v6  ;;  %v2020_v13 = vld [vmem:[#allocation2 + $0xe0] sm:$0xff]  ;;  %v2023_v34 = vld [vmem:[#allocation2 + $0x10] sm:$0xff] }
 0x3f5   : > { %2681 = vrcp.f32 %v2053_v22  ;;  %v2024_v40 = vld [vmem:[#allocation2 + $0xa0] sm:$0xff] }
 0x3f6   : > { %2683 = vrcp.f32 %v2054_v58  ;;  %v2025_v49 = vld [vmem:[#allocation2 + $0x20] sm:$0xff] }
 0x3f7   : > { %v2660_v35 = vpop.eup %2659  ;;  %2685 = vrcp.f32 %v2055_v25 }
 0x3f8   : > { %v2662_v53 = vpop.eup %2661  ;;  %v2059_v2 = vmul.f32 %v2660_v35, %v2010_v0  ;;  %2687 = vrcp.f32 %v2056_v11 }
 0x3f9   : > { %v2664_v24 = vpop.eup %2663  ;;  %v2061_v8 = vmul.f32 %v2662_v53, %v2011_v51  ;;  %2689 = vrcp.f32 %v2057_v32 }
 0x3fa   : > { %v2666_v12 = vpop.eup %2665  ;;  %2090 = vst [vmem:[#allocation3] sm:$0xff] %v2059_v2  ;;  %v2063_v60 = vmul.f32 %v2664_v24, %v2012_v54 }
 0x3fb   : > { %v2668_v45 = vpop.eup %2667  ;;  %2091 = vst [vmem:[#allocation3 + $0x8] sm:$0xff] %v2061_v8  ;;  %v2065_v4 = vmul.f32 %v2666_v12, %v2013_v3 }
 0x3fc   : > { %v2670_v44 = vpop.eup %2669  ;;  %2092 = vst [vmem:[#allocation3 + $0x10] sm:$0xff] %v2063_v60  ;;  %v2067_v50 = vmul.f32 %v2668_v45, %v2014_v55 }
 0x3fd   : > { %v2672_v5 = vpop.eup %2671  ;;  %2093 = vst [vmem:[#allocation3 + $0x18] sm:$0xff] %v2065_v4  ;;  %v2069_v46 = vmul.f32 %v2670_v44, %v2015_v47 }
 0x3fe   : > { %v2674_v63 = vpop.eup %2673  ;;  %2094 = vst [vmem:[#allocation3 + $0x20] sm:$0xff] %v2067_v50  ;;  %v2071_v57 = vmul.f32 %v2672_v5, %v2016_v43 }
 0x3ff   : > { %v2676_v9 = vpop.eup %2675  ;;  %2095 = vst [vmem:[#allocation3 + $0x28] sm:$0xff] %v2069_v46  ;;  %v2073_v39 = vmul.f32 %v2674_v63, %v2017_v41 }
 0x400   : > { %v2678_v26 = vpop.eup %2677  ;;  %2096 = vst [vmem:[#allocation3 + $0x30] sm:$0xff] %v2071_v57  ;;  %v2075_v15 = vmul.f32 %v2676_v9, %v2018_v17 }
 0x401   : > { %v2680_v1 = vpop.eup %2679  ;;  %2097 = vst [vmem:[#allocation3 + $0x38] sm:$0xff] %v2073_v39  ;;  %v2077_v52 = vmul.f32 %v2678_v26, %v2019_v42 }
 0x402   : > { %v2682_v14 = vpop.eup %2681  ;;  %2098 = vst [vmem:[#allocation3 + $0x40] sm:$0xff] %v2075_v15  ;;  %v2079_v48 = vmul.f32 %v2680_v1, %v2020_v13 }
 0x403   : > { %v2684_v33 = vpop.eup %2683  ;;  %2099 = vst [vmem:[#allocation3 + $0x48] sm:$0xff] %v2077_v52  ;;  %v2081_v61 = vmul.f32 %v2682_v14, %v2021_v38 }
 0x404   : > { %v2686_v30 = vpop.eup %2685  ;;  %2100 = vst [vmem:[#allocation3 + $0x50] sm:$0xff] %v2079_v48  ;;  %v2083_v28 = vmul.f32 %v2684_v33, %v2022_v36 }
 0x405   : > { %v2688_v37 = vpop.eup %2687  ;;  %2101 = vst [vmem:[#allocation3 + $0x58] sm:$0xff] %v2081_v61  ;;  %v2085_v23 = vmul.f32 %v2686_v30, %v2023_v34 }
 0x406   : > { %v2690_v10 = vpop.eup %2689  ;;  %2102 = vst [vmem:[#allocation3 + $0x60] sm:$0xff] %v2083_v28  ;;  %v2087_v18 = vmul.f32 %v2688_v37, %v2024_v40 }
 0x407   : > { %2103 = vst [vmem:[#allocation3 + $0x68] sm:$0xff] %v2085_v23  ;;  %v2089_v20 = vmul.f32 %v2690_v10, %v2025_v49 }
 0x408   : > { %2104 = vst [vmem:[#allocation3 + $0x70] sm:$0xff] %v2087_v18 }
 0x409   : > { %2105 = vst [vmem:[#allocation3 + $0x78] sm:$0xff] %v2089_v20 }
 0x40a PF: > { %p2536_p6 = scmp.eq.s32.totalorder %s2770_s19, 1  ;;  %s2731_s23 = smov [#allocation3]  }
 0x40b   : > { %s2112_s25 = sshll.u32 %s2731_s23, 4  ;;  %s2113_s25 = int_to_ptr.vmem [resolvable:$true] %s2112_s25 }
 0x40c   : > { %s2691_s26 = scalar_lea.vmem %s2113_s25, 2048  ;;  %p2698_p10 = scmp.lt.s32.totalorder %s2113_s25, %s2113_s25 }
 0x40d   : > { %p2692_p7 = scmp.ne.s32.totalorder %s2113_s25, %s2691_s26  ;;  %p2699_p11 = scmp.lt.s32.totalorder %s2691_s26, %s2691_s26 }
 0x40f   : > { %p2693_p8 = pnand %p2692_p7, %p2536_p6  ;;  %p2700_p12 = por %p2699_p11, %p2698_p10 }
 0x411   : > { %p2694_p9 = pneg %p2693_p8 }
 0x413   : > { %p2701_p13 = pnand %p2700_p12, %p2694_p9 }
 0x415   : > { %2704 = shalt.err (!%p2701_p13)
}
 0x416   : > { %s2732_s28 = smov 128   ;;  %s2733_s29 = smov 8  }
 0x417   : > { %2533 = dma.vmem_to_hbm [thread:$0]  (%p2536_p6), %s2113_s25, 2048, %s3272_s5, [#allocation4], %s2732_s28, %s2732_s28, %s2733_s29  }
 0x418   : > { %2720 = dma.done.wait (%p2536_p6), [#allocation4], 2048  }
 0x419   : > { %2722 = vsyncadd (%p2536_p6), [#allocation4], 4294965248 }
 0x41a PF: > { %s16_s18 = sadd.s32 1, %s2725_s18  }
 0x41b   : > { %p13_p0 = scmp.ge.s32.totalorder %s16_s18, 4  }
 0x41d   :  { %15 = sbr.rel (!%p13_p0) target bundleno = 1 (0x1), region = 78 }
 0x422   :  { %2128 = vsyncpa [#allocation4], 1 }
 0x423   :  { %2130 = vsyncpa [#allocation4 + $0x1], 1 }

</bundles_post_ra>
